<compile_context>
chip_gen: v7x
topology: tpu7x:2x2x1
jax: 0.10.0
libtpu: 0.0.40
codegen_flags: <defaults>
</compile_context>

<pallas_src>
import jax
import jax.numpy as jnp
import numpy as np
from jax.experimental import pallas as pl
from jax.experimental.pallas import tpu as pltpu

LANE = 128


def _round_up(x, m):
    return (x + m - 1) // m * m


def _vmem_limit_bytes():
    # ~85% of physical VMEM: ~54 MiB on v7x (64 MiB), ~108 MiB on v5e/v6e (128 MiB).
    try:
        cap = pltpu.get_tpu_info().vmem_capacity_bytes
        if cap:
            return int(cap * 0.85)
    except Exception:
        pass
    return 48 * 1024 * 1024


# ----------------------------------------------------------------------------
# Fused kernel: 2 x (HeteroGraphConv('stack', norm='right') + ReLU + Rela_Attention).
# ----------------------------------------------------------------------------
def fused_rgcn_attention_kernel(
        adj_ref, invdeg_ref, x_ref,
        w1_ref, b1_ref, a1p1w_ref, a1p1b_ref, a1p2wT_ref,
        w2_ref, b2_ref, a2p1w_ref, a2p1b_ref, a2p2wT_ref,
        out_ref):
    RN, N = adj_ref.shape
    R = RN // N
    Fp = x_ref.shape[1]
    agg_dtype = adj_ref.dtype            # narrow MXU operand dtype (bf16 / f32 / fp8)

    def layer(x, w_ref, b_ref, p1w_ref, p1b_ref, p2wT_ref):
        # (1) project-first (associativity): ONE wide matmul, R*Fp output lanes.
        xw = jnp.dot(x, w_ref[...], preferred_element_type=jnp.float32)   # [N, R*Fp]
        xw_n = xw.astype(agg_dtype)

        # Loop-invariant loads hoisted out of the static relation loop.
        b = b_ref[...]                    # [R,  Fp]
        p1w = p1w_ref[...]                # [Fp, Ap]
        p1b = p1b_ref[...]                # [1,  Ap]
        p2wT = p2wT_ref[...]              # [1,  Ap]

        zs, scores = [], []
        for r in range(R):                # static unroll, R is small
            # (2) aggregation on the MXU with narrow operands + f32 accumulate;
            #     adjacency is exact 0/1, 1/deg applied afterwards in f32.
            agg = jnp.dot(adj_ref[r * N:(r + 1) * N, :],
                          xw_n[:, r * Fp:(r + 1) * Fp],
                          preferred_element_type=jnp.float32)             # [N, Fp]
            h = agg * invdeg_ref[r * N:(r + 1) * N, :] + b[r:r + 1, :]
            z = jnp.maximum(h, 0.0)                                        # ReLU
            zs.append(z)

            # (3)+(4) fused attention projection + tanh + node-mean → scalar
            #         score (no [R*N, Ap] intermediate materialized).
            t = jnp.tanh(jnp.dot(z, p1w, preferred_element_type=jnp.float32) + p1b)
            tmean = jnp.mean(t, axis=0, keepdims=True)                     # [1, Ap]
            scores.append(jnp.sum(tmean * p2wT, axis=1, keepdims=True))    # [1, 1]

        # (5) softmax over relations + relation-weighted sum (stays in registers).
        smax = scores[0]
        for r in range(1, R):
            smax = jnp.maximum(smax, scores[r])
        exps = [jnp.exp(s - smax) for s in scores]
        denom = exps[0]
        for r in range(1, R):
            denom = denom + exps[r]
        inv = 1.0 / denom
        out = (exps[0] * inv) * zs[0]
        for r in range(1, R):
            out = out + (exps[r] * inv) * zs[r]
        return out                                                         # [N, Fp]

    h1 = layer(x_ref[...], w1_ref, b1_ref, a1p1w_ref, a1p1b_ref, a1p2wT_ref)
    h2 = layer(h1, w2_ref, b2_ref, a2p1w_ref, a2p1b_ref, a2p2wT_ref)
    out_ref[...] = h2.astype(out_ref.dtype)


# ----------------------------------------------------------------------------
# Static preprocessing (done ONCE per graph / parameter set, not per call).
# ----------------------------------------------------------------------------
def prepare_graph(adjT, agg_dtype=jnp.bfloat16):
    """adjT: [R, N, N] transposed 0/1 adjacency (dst on rows). Returns
    (adj [R*N, N] in agg_dtype — values stay exact 0/1 —, inv_deg [R*N, 1] f32)."""
    R, N, _ = adjT.shape
    deg = jnp.maximum(adjT.sum(-1, keepdims=True), 1.0)                    # [R,N,1]
    inv_deg = (1.0 / deg).astype(jnp.float32).reshape(R * N, 1)
    adj = adjT.astype(agg_dtype).reshape(R * N, N)
    return adj, inv_deg


def prepare_params(params):
    """Zero-pad feature dims to 128 lanes (exact: padded cols are zero) and
    concatenate the per-relation weights into one wide [Fp, R*Fp] matrix."""
    f32 = jnp.float32
    R, F, _ = params["w1"].shape
    A = params["att1_w1"].shape[1]
    Fp = _round_up(F, LANE)
    Ap = _round_up(A, LANE)

    def pad2(a, d0, d1):
        a = jnp.asarray(a, f32)
        return jnp.pad(a, ((0, d0 - a.shape[0]), (0, d1 - a.shape[1])))

    def wcat(w):                               # [R,F,F] → [Fp, R*Fp]
        w = jnp.asarray(w, f32)
        return jnp.concatenate([pad2(w[r], Fp, Fp) for r in range(R)], axis=1)

    return dict(
        F=F,
        w1=wcat(params["w1"]),
        b1=pad2(params["b1"], R, Fp),
        w2=wcat(params["w2"]),
        b2=pad2(params["b2"], R, Fp),
        a1p1w=pad2(params["att1_w1"], Fp, Ap),
        a1p1b=pad2(params["att1_b1"], 1, Ap),
        a1p2wT=pad2(params["att1_w2"].T, 1, Ap),
        a2p1w=pad2(params["att2_w1"], Fp, Ap),
        a2p1b=pad2(params["att2_b1"], 1, Ap),
        a2p2wT=pad2(params["att2_w2"].T, 1, Ap),
    )


# ----------------------------------------------------------------------------
# Forward: one fused pallas_call (h1 never leaves VMEM).
# ----------------------------------------------------------------------------
def rgcn_attention_forward(adj, inv_deg, x, pp):
    RN, N = adj.shape
    R = RN // N
    F = pp["F"]
    Fp = pp["w1"].shape[0]
    Ap = pp["a1p1w"].shape[1]
    f32 = jnp.float32
    assert N % 16 == 0, "node count must be a multiple of 16 (bf16 sublane packing)"

    x_p = jnp.pad(jnp.asarray(x, f32), ((0, 0), (0, Fp - x.shape[1])))

    vmem = pl.BlockSpec(memory_space=pltpu.MemorySpace.VMEM)

    adj_bytes = int(adj.size) * adj.dtype.itemsize
    param_bytes = 4 * sum(int(v.size) for k, v in pp.items() if k != "F")
    flops = 2 * (2 * N * Fp * (R * Fp)        # wide projection
                 + 2 * R * N * N * Fp          # aggregation
                 + 2 * R * N * Fp * Ap)        # attention projection
    transcendentals = 2 * (R * N * Ap + R)
    bytes_accessed = int(adj_bytes + 4 * (inv_deg.size + x_p.size + N * Fp) + param_bytes)

    out_p = pl.pallas_call(
        fused_rgcn_attention_kernel,
        out_shape=jax.ShapeDtypeStruct((N, Fp), f32),
        in_specs=[vmem] * 13,
        out_specs=vmem,
        compiler_params=pltpu.CompilerParams(vmem_limit_bytes=_vmem_limit_bytes()),
        cost_estimate=pl.CostEstimate(flops=flops,
                                      transcendentals=transcendentals,
                                      bytes_accessed=bytes_accessed),
    )(adj, inv_deg, x_p,
      pp["w1"], pp["b1"], pp["a1p1w"], pp["a1p1b"], pp["a1p2wT"],
      pp["w2"], pp["b2"], pp["a2p1w"], pp["a2p1b"], pp["a2p2wT"])

    return out_p[:, :F]   # drop lane padding


# ----------------------------------------------------------------------------
# Pure-JAX f32 reference (faithful to the PyTorch module).
# ----------------------------------------------------------------------------
def ref_layer(adjT, x, w, b, p1w, p1b, p2w):
    deg = jnp.maximum(adjT.sum(-1, keepdims=True), 1.0)          # [R,N,1]
    m = jnp.einsum("rns,sf->rnf", adjT, x) / deg
    h = jnp.einsum("rnf,rfh->rnh", m, w) + b[:, None, :]
    z = jax.nn.relu(h)                                           # [R,N,Fh]
    t = jnp.tanh(jnp.einsum("rnh,hk->rnk", z, p1w) + p1b[None, :, :])
    s = jnp.einsum("rnk,ko->rno", t, p2w)                        # [R,N,1]
    beta = jax.nn.softmax(s.mean(axis=1), axis=0)                # [R,1]
    return (beta[:, None, :] * z).sum(0)                         # [N,Fh]


def ref_forward(adjT, x, p):
    h1 = ref_layer(adjT, x, p["w1"], p["b1"], p["att1_w1"], p["att1_b1"], p["att1_w2"])
    h2 = ref_layer(adjT, h1, p["w2"], p["b2"], p["att2_w1"], p["att2_b1"], p["att2_w2"])
    return h2


if __name__ == "__main__":
    # Small, self-consistent sizes (module requires in_feat == hidden_feat == out_feat).
    N, R = 64, 3               # nodes, relations
    IN_FEAT = HIDDEN = OUT = 32
    ATT_H = 32                 # Rela_Attention hidden_size

    key = jax.random.PRNGKey(0)
    ks = jax.random.split(key, 12)

    # Dense per-relation adjacency (transposed: [r, dst, src]) with self-loops.
    adj01 = (jax.random.uniform(ks[0], (R, N, N)) < 0.25).astype(jnp.float32)
    adjT = jnp.clip(adj01 + jnp.eye(N, dtype=jnp.float32)[None], 0.0, 1.0)

    x = jax.random.normal(ks[1], (N, IN_FEAT), jnp.float32)

    scale = 0.1
    params = {
        "w1": scale * jax.random.normal(ks[2], (R, IN_FEAT, HIDDEN), jnp.float32),
        "b1": scale * jax.random.normal(ks[3], (R, HIDDEN), jnp.float32),
        "w2": scale * jax.random.normal(ks[4], (R, HIDDEN, HIDDEN), jnp.float32),
        "b2": scale * jax.random.normal(ks[5], (R, HIDDEN), jnp.float32),
        "att1_w1": scale * jax.random.normal(ks[6], (HIDDEN, ATT_H), jnp.float32),
        "att1_b1": scale * jax.random.normal(ks[7], (1, ATT_H), jnp.float32),
        "att1_w2": scale * jax.random.normal(ks[8], (ATT_H, 1), jnp.float32),
        "att2_w1": scale * jax.random.normal(ks[9], (OUT, ATT_H), jnp.float32),
        "att2_b1": scale * jax.random.normal(ks[10], (1, ATT_H), jnp.float32),
        "att2_w2": scale * jax.random.normal(ks[11], (ATT_H, 1), jnp.float32),
    }

    ref = jax.block_until_ready(ref_forward(adjT, x, params))
    pp = prepare_params(params)

    # --- exact f32 adjacency path: tight logic check against the reference ---
    adj_f32, inv_deg = prepare_graph(adjT, agg_dtype=jnp.float32)
    out_f32 = jax.block_until_ready(rgcn_attention_forward(adj_f32, inv_deg, x, pp))
    assert out_f32.shape == (N, OUT)
    np.testing.assert_allclose(np.asarray(out_f32), np.asarray(ref), rtol=1e-4, atol=1e-4)

    # --- bf16-adjacency fast path (perf config): exact 0/1 adjacency in bf16,
    #     bf16 MXU aggregation with f32 accumulate, 1/deg applied post-matmul ---
    adj_bf16, inv_deg = prepare_graph(adjT, agg_dtype=jnp.bfloat16)
    out_bf16 = jax.block_until_ready(rgcn_attention_forward(adj_bf16, inv_deg, x, pp))
    assert out_bf16.shape == (N, OUT)
    np.testing.assert_allclose(np.asarray(out_bf16), np.asarray(ref), rtol=2e-2, atol=2e-3)

    print("KERNEL_OK")
</pallas_src>

<mosaic_0001>
module attributes {stable_mosaic.version = 11 : i64} {
  func.func @fused_rgcn_attention_kernel(%arg0: memref<192x64xf32, #tpu.memory_space<vmem>>, %arg1: memref<192x1xf32, #tpu.memory_space<vmem>>, %arg2: memref<64x128xf32, #tpu.memory_space<vmem>>, %arg3: memref<128x384xf32, #tpu.memory_space<vmem>>, %arg4: memref<3x128xf32, #tpu.memory_space<vmem>>, %arg5: memref<128x128xf32, #tpu.memory_space<vmem>>, %arg6: memref<1x128xf32, #tpu.memory_space<vmem>>, %arg7: memref<1x128xf32, #tpu.memory_space<vmem>>, %arg8: memref<128x384xf32, #tpu.memory_space<vmem>>, %arg9: memref<3x128xf32, #tpu.memory_space<vmem>>, %arg10: memref<128x128xf32, #tpu.memory_space<vmem>>, %arg11: memref<1x128xf32, #tpu.memory_space<vmem>>, %arg12: memref<1x128xf32, #tpu.memory_space<vmem>>, %arg13: memref<64x128xf32, #tpu.memory_space<vmem>>) attributes {dimension_semantics = [], scalar_prefetch = 0 : i64, scratch_operands = 0 : i64, tpu.core_type = #tpu.core_type<tc>} {
    %c0 = arith.constant 0 : index
    %c0_0 = arith.constant 0 : index
    %0 = vector.load %arg2[%c0, %c0_0] : memref<64x128xf32, #tpu.memory_space<vmem>>, vector<64x128xf32>
    %c0_1 = arith.constant 0 : index
    %c0_2 = arith.constant 0 : index
    %1 = vector.load %arg3[%c0_1, %c0_2] : memref<128x384xf32, #tpu.memory_space<vmem>>, vector<128x384xf32>
    %cst = arith.constant dense<0.000000e+00> : vector<64x384xf32>
    %2 = tpu.matmul %0, %1, %cst {dimension_numbers = #tpu.dot_dimension_numbers<[1], [0], [0], [1], [0, 0, 1, 1], [], []>} : vector<64x128xf32>, vector<128x384xf32>, vector<64x384xf32> -> vector<64x384xf32>
    %c0_3 = arith.constant 0 : index
    %c0_4 = arith.constant 0 : index
    %3 = vector.load %arg4[%c0_3, %c0_4] : memref<3x128xf32, #tpu.memory_space<vmem>>, vector<3x128xf32>
    %c0_5 = arith.constant 0 : index
    %c0_6 = arith.constant 0 : index
    %4 = vector.load %arg5[%c0_5, %c0_6] : memref<128x128xf32, #tpu.memory_space<vmem>>, vector<128x128xf32>
    %c0_7 = arith.constant 0 : index
    %c0_8 = arith.constant 0 : index
    %5 = vector.load %arg6[%c0_7, %c0_8] : memref<1x128xf32, #tpu.memory_space<vmem>>, vector<1x128xf32>
    %c0_9 = arith.constant 0 : index
    %c0_10 = arith.constant 0 : index
    %6 = vector.load %arg7[%c0_9, %c0_10] : memref<1x128xf32, #tpu.memory_space<vmem>>, vector<1x128xf32>
    %c0_11 = arith.constant 0 : index
    %c0_12 = arith.constant 0 : index
    %7 = vector.load %arg0[%c0_11, %c0_12] : memref<192x64xf32, #tpu.memory_space<vmem>>, vector<64x64xf32>
    %8 = vector.extract_strided_slice %2 {offsets = [0, 0], sizes = [64, 128], strides = [1, 1]} : vector<64x384xf32> to vector<64x128xf32>
    %cst_13 = arith.constant dense<0.000000e+00> : vector<64x128xf32>
    %9 = tpu.matmul %7, %8, %cst_13 {dimension_numbers = #tpu.dot_dimension_numbers<[1], [0], [0], [1], [0, 0, 1, 1], [], []>} : vector<64x64xf32>, vector<64x128xf32>, vector<64x128xf32> -> vector<64x128xf32>
    %c0_14 = arith.constant 0 : index
    %c0_15 = arith.constant 0 : index
    %10 = vector.load %arg1[%c0_14, %c0_15] : memref<192x1xf32, #tpu.memory_space<vmem>>, vector<64x1xf32>
    %11 = vector.broadcast %10 : vector<64x1xf32> to vector<64x128xf32>
    %12 = arith.mulf %9, %11 : vector<64x128xf32>
    %13 = vector.extract_strided_slice %3 {offsets = [0, 0], sizes = [1, 128], strides = [1, 1]} : vector<3x128xf32> to vector<1x128xf32>
    %14 = vector.broadcast %13 : vector<1x128xf32> to vector<64x128xf32>
    %15 = arith.addf %12, %14 : vector<64x128xf32>
    %cst_16 = arith.constant 0.000000e+00 : f32
    %16 = vector.broadcast %cst_16 : f32 to vector<64x128xf32>
    %17 = arith.maximumf %15, %16 : vector<64x128xf32>
    %cst_17 = arith.constant dense<0.000000e+00> : vector<64x128xf32>
    %18 = tpu.matmul %17, %4, %cst_17 {dimension_numbers = #tpu.dot_dimension_numbers<[1], [0], [0], [1], [0, 0, 1, 1], [], []>} : vector<64x128xf32>, vector<128x128xf32>, vector<64x128xf32> -> vector<64x128xf32>
    %19 = vector.broadcast %5 : vector<1x128xf32> to vector<64x128xf32>
    %20 = arith.addf %18, %19 : vector<64x128xf32>
    %21 = math.tanh %20 : vector<64x128xf32>
    %cst_18 = arith.constant dense<0.000000e+00> : vector<128xf32>
    %22 = vector.multi_reduction <add>, %21, %cst_18 [0] : vector<64x128xf32> to vector<128xf32>
    %23 = vector.shape_cast %22 : vector<128xf32> to vector<1x128xf32>
    %cst_19 = arith.constant 6.400000e+01 : f32
    %24 = vector.broadcast %cst_19 : f32 to vector<1x128xf32>
    %25 = arith.divf %23, %24 : vector<1x128xf32>
    %26 = arith.mulf %25, %6 : vector<1x128xf32>
    %cst_20 = arith.constant dense<0.000000e+00> : vector<1xf32>
    %27 = vector.multi_reduction <add>, %26, %cst_20 [1] : vector<1x128xf32> to vector<1xf32>
    %28 = vector.shape_cast %27 : vector<1xf32> to vector<1x1xf32>
    %c64 = arith.constant 64 : index
    %c0_21 = arith.constant 0 : index
    %29 = vector.load %arg0[%c64, %c0_21] : memref<192x64xf32, #tpu.memory_space<vmem>>, vector<64x64xf32>
    %30 = vector.extract_strided_slice %2 {offsets = [0, 128], sizes = [64, 128], strides = [1, 1]} : vector<64x384xf32> to vector<64x128xf32>
    %cst_22 = arith.constant dense<0.000000e+00> : vector<64x128xf32>
    %31 = tpu.matmul %29, %30, %cst_22 {dimension_numbers = #tpu.dot_dimension_numbers<[1], [0], [0], [1], [0, 0, 1, 1], [], []>} : vector<64x64xf32>, vector<64x128xf32>, vector<64x128xf32> -> vector<64x128xf32>
    %c64_23 = arith.constant 64 : index
    %c0_24 = arith.constant 0 : index
    %32 = vector.load %arg1[%c64_23, %c0_24] : memref<192x1xf32, #tpu.memory_space<vmem>>, vector<64x1xf32>
    %33 = vector.broadcast %32 : vector<64x1xf32> to vector<64x128xf32>
    %34 = arith.mulf %31, %33 : vector<64x128xf32>
    %35 = vector.extract_strided_slice %3 {offsets = [1, 0], sizes = [1, 128], strides = [1, 1]} : vector<3x128xf32> to vector<1x128xf32>
    %36 = vector.broadcast %35 : vector<1x128xf32> to vector<64x128xf32>
    %37 = arith.addf %34, %36 : vector<64x128xf32>
    %cst_25 = arith.constant 0.000000e+00 : f32
    %38 = vector.broadcast %cst_25 : f32 to vector<64x128xf32>
    %39 = arith.maximumf %37, %38 : vector<64x128xf32>
    %cst_26 = arith.constant dense<0.000000e+00> : vector<64x128xf32>
    %40 = tpu.matmul %39, %4, %cst_26 {dimension_numbers = #tpu.dot_dimension_numbers<[1], [0], [0], [1], [0, 0, 1, 1], [], []>} : vector<64x128xf32>, vector<128x128xf32>, vector<64x128xf32> -> vector<64x128xf32>
    %41 = vector.broadcast %5 : vector<1x128xf32> to vector<64x128xf32>
    %42 = arith.addf %40, %41 : vector<64x128xf32>
    %43 = math.tanh %42 : vector<64x128xf32>
    %cst_27 = arith.constant dense<0.000000e+00> : vector<128xf32>
    %44 = vector.multi_reduction <add>, %43, %cst_27 [0] : vector<64x128xf32> to vector<128xf32>
    %45 = vector.shape_cast %44 : vector<128xf32> to vector<1x128xf32>
    %cst_28 = arith.constant 6.400000e+01 : f32
    %46 = vector.broadcast %cst_28 : f32 to vector<1x128xf32>
    %47 = arith.divf %45, %46 : vector<1x128xf32>
    %48 = arith.mulf %47, %6 : vector<1x128xf32>
    %cst_29 = arith.constant dense<0.000000e+00> : vector<1xf32>
    %49 = vector.multi_reduction <add>, %48, %cst_29 [1] : vector<1x128xf32> to vector<1xf32>
    %50 = vector.shape_cast %49 : vector<1xf32> to vector<1x1xf32>
    %c128 = arith.constant 128 : index
    %c0_30 = arith.constant 0 : index
    %51 = vector.load %arg0[%c128, %c0_30] : memref<192x64xf32, #tpu.memory_space<vmem>>, vector<64x64xf32>
    %52 = vector.extract_strided_slice %2 {offsets = [0, 256], sizes = [64, 128], strides = [1, 1]} : vector<64x384xf32> to vector<64x128xf32>
    %cst_31 = arith.constant dense<0.000000e+00> : vector<64x128xf32>
    %53 = tpu.matmul %51, %52, %cst_31 {dimension_numbers = #tpu.dot_dimension_numbers<[1], [0], [0], [1], [0, 0, 1, 1], [], []>} : vector<64x64xf32>, vector<64x128xf32>, vector<64x128xf32> -> vector<64x128xf32>
    %c128_32 = arith.constant 128 : index
    %c0_33 = arith.constant 0 : index
    %54 = vector.load %arg1[%c128_32, %c0_33] : memref<192x1xf32, #tpu.memory_space<vmem>>, vector<64x1xf32>
    %55 = vector.broadcast %54 : vector<64x1xf32> to vector<64x128xf32>
    %56 = arith.mulf %53, %55 : vector<64x128xf32>
    %57 = vector.extract_strided_slice %3 {offsets = [2, 0], sizes = [1, 128], strides = [1, 1]} : vector<3x128xf32> to vector<1x128xf32>
    %58 = vector.broadcast %57 : vector<1x128xf32> to vector<64x128xf32>
    %59 = arith.addf %56, %58 : vector<64x128xf32>
    %cst_34 = arith.constant 0.000000e+00 : f32
    %60 = vector.broadcast %cst_34 : f32 to vector<64x128xf32>
    %61 = arith.maximumf %59, %60 : vector<64x128xf32>
    %cst_35 = arith.constant dense<0.000000e+00> : vector<64x128xf32>
    %62 = tpu.matmul %61, %4, %cst_35 {dimension_numbers = #tpu.dot_dimension_numbers<[1], [0], [0], [1], [0, 0, 1, 1], [], []>} : vector<64x128xf32>, vector<128x128xf32>, vector<64x128xf32> -> vector<64x128xf32>
    %63 = vector.broadcast %5 : vector<1x128xf32> to vector<64x128xf32>
    %64 = arith.addf %62, %63 : vector<64x128xf32>
    %65 = math.tanh %64 : vector<64x128xf32>
    %cst_36 = arith.constant dense<0.000000e+00> : vector<128xf32>
    %66 = vector.multi_reduction <add>, %65, %cst_36 [0] : vector<64x128xf32> to vector<128xf32>
    %67 = vector.shape_cast %66 : vector<128xf32> to vector<1x128xf32>
    %cst_37 = arith.constant 6.400000e+01 : f32
    %68 = vector.broadcast %cst_37 : f32 to vector<1x128xf32>
    %69 = arith.divf %67, %68 : vector<1x128xf32>
    %70 = arith.mulf %69, %6 : vector<1x128xf32>
    %cst_38 = arith.constant dense<0.000000e+00> : vector<1xf32>
    %71 = vector.multi_reduction <add>, %70, %cst_38 [1] : vector<1x128xf32> to vector<1xf32>
    %72 = vector.shape_cast %71 : vector<1xf32> to vector<1x1xf32>
    %73 = arith.maximumf %28, %50 : vector<1x1xf32>
    %74 = arith.maximumf %73, %72 : vector<1x1xf32>
    %75 = arith.subf %28, %74 : vector<1x1xf32>
    %76 = math.exp %75 : vector<1x1xf32>
    %77 = arith.subf %50, %74 : vector<1x1xf32>
    %78 = math.exp %77 : vector<1x1xf32>
    %79 = arith.subf %72, %74 : vector<1x1xf32>
    %80 = math.exp %79 : vector<1x1xf32>
    %81 = arith.addf %76, %78 : vector<1x1xf32>
    %82 = arith.addf %81, %80 : vector<1x1xf32>
    %cst_39 = arith.constant 1.000000e+00 : f32
    %83 = vector.broadcast %cst_39 : f32 to vector<1x1xf32>
    %84 = arith.divf %83, %82 : vector<1x1xf32>
    %85 = arith.mulf %76, %84 : vector<1x1xf32>
    %86 = vector.broadcast %85 : vector<1x1xf32> to vector<64x128xf32>
    %87 = arith.mulf %86, %17 : vector<64x128xf32>
    %88 = arith.mulf %78, %84 : vector<1x1xf32>
    %89 = vector.broadcast %88 : vector<1x1xf32> to vector<64x128xf32>
    %90 = arith.mulf %89, %39 : vector<64x128xf32>
    %91 = arith.addf %87, %90 : vector<64x128xf32>
    %92 = arith.mulf %80, %84 : vector<1x1xf32>
    %93 = vector.broadcast %92 : vector<1x1xf32> to vector<64x128xf32>
    %94 = arith.mulf %93, %61 : vector<64x128xf32>
    %95 = arith.addf %91, %94 : vector<64x128xf32>
    %c0_40 = arith.constant 0 : index
    %c0_41 = arith.constant 0 : index
    %96 = vector.load %arg8[%c0_40, %c0_41] : memref<128x384xf32, #tpu.memory_space<vmem>>, vector<128x384xf32>
    %cst_42 = arith.constant dense<0.000000e+00> : vector<64x384xf32>
    %97 = tpu.matmul %95, %96, %cst_42 {dimension_numbers = #tpu.dot_dimension_numbers<[1], [0], [0], [1], [0, 0, 1, 1], [], []>} : vector<64x128xf32>, vector<128x384xf32>, vector<64x384xf32> -> vector<64x384xf32>
    %c0_43 = arith.constant 0 : index
    %c0_44 = arith.constant 0 : index
    %98 = vector.load %arg9[%c0_43, %c0_44] : memref<3x128xf32, #tpu.memory_space<vmem>>, vector<3x128xf32>
    %c0_45 = arith.constant 0 : index
    %c0_46 = arith.constant 0 : index
    %99 = vector.load %arg10[%c0_45, %c0_46] : memref<128x128xf32, #tpu.memory_space<vmem>>, vector<128x128xf32>
    %c0_47 = arith.constant 0 : index
    %c0_48 = arith.constant 0 : index
    %100 = vector.load %arg11[%c0_47, %c0_48] : memref<1x128xf32, #tpu.memory_space<vmem>>, vector<1x128xf32>
    %c0_49 = arith.constant 0 : index
    %c0_50 = arith.constant 0 : index
    %101 = vector.load %arg12[%c0_49, %c0_50] : memref<1x128xf32, #tpu.memory_space<vmem>>, vector<1x128xf32>
    %c0_51 = arith.constant 0 : index
    %c0_52 = arith.constant 0 : index
    %102 = vector.load %arg0[%c0_51, %c0_52] : memref<192x64xf32, #tpu.memory_space<vmem>>, vector<64x64xf32>
    %103 = vector.extract_strided_slice %97 {offsets = [0, 0], sizes = [64, 128], strides = [1, 1]} : vector<64x384xf32> to vector<64x128xf32>
    %cst_53 = arith.constant dense<0.000000e+00> : vector<64x128xf32>
    %104 = tpu.matmul %102, %103, %cst_53 {dimension_numbers = #tpu.dot_dimension_numbers<[1], [0], [0], [1], [0, 0, 1, 1], [], []>} : vector<64x64xf32>, vector<64x128xf32>, vector<64x128xf32> -> vector<64x128xf32>
    %c0_54 = arith.constant 0 : index
    %c0_55 = arith.constant 0 : index
    %105 = vector.load %arg1[%c0_54, %c0_55] : memref<192x1xf32, #tpu.memory_space<vmem>>, vector<64x1xf32>
    %106 = vector.broadcast %105 : vector<64x1xf32> to vector<64x128xf32>
    %107 = arith.mulf %104, %106 : vector<64x128xf32>
    %108 = vector.extract_strided_slice %98 {offsets = [0, 0], sizes = [1, 128], strides = [1, 1]} : vector<3x128xf32> to vector<1x128xf32>
    %109 = vector.broadcast %108 : vector<1x128xf32> to vector<64x128xf32>
    %110 = arith.addf %107, %109 : vector<64x128xf32>
    %cst_56 = arith.constant 0.000000e+00 : f32
    %111 = vector.broadcast %cst_56 : f32 to vector<64x128xf32>
    %112 = arith.maximumf %110, %111 : vector<64x128xf32>
    %cst_57 = arith.constant dense<0.000000e+00> : vector<64x128xf32>
    %113 = tpu.matmul %112, %99, %cst_57 {dimension_numbers = #tpu.dot_dimension_numbers<[1], [0], [0], [1], [0, 0, 1, 1], [], []>} : vector<64x128xf32>, vector<128x128xf32>, vector<64x128xf32> -> vector<64x128xf32>
    %114 = vector.broadcast %100 : vector<1x128xf32> to vector<64x128xf32>
    %115 = arith.addf %113, %114 : vector<64x128xf32>
    %116 = math.tanh %115 : vector<64x128xf32>
    %cst_58 = arith.constant dense<0.000000e+00> : vector<128xf32>
    %117 = vector.multi_reduction <add>, %116, %cst_58 [0] : vector<64x128xf32> to vector<128xf32>
    %118 = vector.shape_cast %117 : vector<128xf32> to vector<1x128xf32>
    %cst_59 = arith.constant 6.400000e+01 : f32
    %119 = vector.broadcast %cst_59 : f32 to vector<1x128xf32>
    %120 = arith.divf %118, %119 : vector<1x128xf32>
    %121 = arith.mulf %120, %101 : vector<1x128xf32>
    %cst_60 = arith.constant dense<0.000000e+00> : vector<1xf32>
    %122 = vector.multi_reduction <add>, %121, %cst_60 [1] : vector<1x128xf32> to vector<1xf32>
    %123 = vector.shape_cast %122 : vector<1xf32> to vector<1x1xf32>
    %c64_61 = arith.constant 64 : index
    %c0_62 = arith.constant 0 : index
    %124 = vector.load %arg0[%c64_61, %c0_62] : memref<192x64xf32, #tpu.memory_space<vmem>>, vector<64x64xf32>
    %125 = vector.extract_strided_slice %97 {offsets = [0, 128], sizes = [64, 128], strides = [1, 1]} : vector<64x384xf32> to vector<64x128xf32>
    %cst_63 = arith.constant dense<0.000000e+00> : vector<64x128xf32>
    %126 = tpu.matmul %124, %125, %cst_63 {dimension_numbers = #tpu.dot_dimension_numbers<[1], [0], [0], [1], [0, 0, 1, 1], [], []>} : vector<64x64xf32>, vector<64x128xf32>, vector<64x128xf32> -> vector<64x128xf32>
    %c64_64 = arith.constant 64 : index
    %c0_65 = arith.constant 0 : index
    %127 = vector.load %arg1[%c64_64, %c0_65] : memref<192x1xf32, #tpu.memory_space<vmem>>, vector<64x1xf32>
    %128 = vector.broadcast %127 : vector<64x1xf32> to vector<64x128xf32>
    %129 = arith.mulf %126, %128 : vector<64x128xf32>
    %130 = vector.extract_strided_slice %98 {offsets = [1, 0], sizes = [1, 128], strides = [1, 1]} : vector<3x128xf32> to vector<1x128xf32>
    %131 = vector.broadcast %130 : vector<1x128xf32> to vector<64x128xf32>
    %132 = arith.addf %129, %131 : vector<64x128xf32>
    %cst_66 = arith.constant 0.000000e+00 : f32
    %133 = vector.broadcast %cst_66 : f32 to vector<64x128xf32>
    %134 = arith.maximumf %132, %133 : vector<64x128xf32>
    %cst_67 = arith.constant dense<0.000000e+00> : vector<64x128xf32>
    %135 = tpu.matmul %134, %99, %cst_67 {dimension_numbers = #tpu.dot_dimension_numbers<[1], [0], [0], [1], [0, 0, 1, 1], [], []>} : vector<64x128xf32>, vector<128x128xf32>, vector<64x128xf32> -> vector<64x128xf32>
    %136 = vector.broadcast %100 : vector<1x128xf32> to vector<64x128xf32>
    %137 = arith.addf %135, %136 : vector<64x128xf32>
    %138 = math.tanh %137 : vector<64x128xf32>
    %cst_68 = arith.constant dense<0.000000e+00> : vector<128xf32>
    %139 = vector.multi_reduction <add>, %138, %cst_68 [0] : vector<64x128xf32> to vector<128xf32>
    %140 = vector.shape_cast %139 : vector<128xf32> to vector<1x128xf32>
    %cst_69 = arith.constant 6.400000e+01 : f32
    %141 = vector.broadcast %cst_69 : f32 to vector<1x128xf32>
    %142 = arith.divf %140, %141 : vector<1x128xf32>
    %143 = arith.mulf %142, %101 : vector<1x128xf32>
    %cst_70 = arith.constant dense<0.000000e+00> : vector<1xf32>
    %144 = vector.multi_reduction <add>, %143, %cst_70 [1] : vector<1x128xf32> to vector<1xf32>
    %145 = vector.shape_cast %144 : vector<1xf32> to vector<1x1xf32>
    %c128_71 = arith.constant 128 : index
    %c0_72 = arith.constant 0 : index
    %146 = vector.load %arg0[%c128_71, %c0_72] : memref<192x64xf32, #tpu.memory_space<vmem>>, vector<64x64xf32>
    %147 = vector.extract_strided_slice %97 {offsets = [0, 256], sizes = [64, 128], strides = [1, 1]} : vector<64x384xf32> to vector<64x128xf32>
    %cst_73 = arith.constant dense<0.000000e+00> : vector<64x128xf32>
    %148 = tpu.matmul %146, %147, %cst_73 {dimension_numbers = #tpu.dot_dimension_numbers<[1], [0], [0], [1], [0, 0, 1, 1], [], []>} : vector<64x64xf32>, vector<64x128xf32>, vector<64x128xf32> -> vector<64x128xf32>
    %c128_74 = arith.constant 128 : index
    %c0_75 = arith.constant 0 : index
    %149 = vector.load %arg1[%c128_74, %c0_75] : memref<192x1xf32, #tpu.memory_space<vmem>>, vector<64x1xf32>
    %150 = vector.broadcast %149 : vector<64x1xf32> to vector<64x128xf32>
    %151 = arith.mulf %148, %150 : vector<64x128xf32>
    %152 = vector.extract_strided_slice %98 {offsets = [2, 0], sizes = [1, 128], strides = [1, 1]} : vector<3x128xf32> to vector<1x128xf32>
    %153 = vector.broadcast %152 : vector<1x128xf32> to vector<64x128xf32>
    %154 = arith.addf %151, %153 : vector<64x128xf32>
    %cst_76 = arith.constant 0.000000e+00 : f32
    %155 = vector.broadcast %cst_76 : f32 to vector<64x128xf32>
    %156 = arith.maximumf %154, %155 : vector<64x128xf32>
    %cst_77 = arith.constant dense<0.000000e+00> : vector<64x128xf32>
    %157 = tpu.matmul %156, %99, %cst_77 {dimension_numbers = #tpu.dot_dimension_numbers<[1], [0], [0], [1], [0, 0, 1, 1], [], []>} : vector<64x128xf32>, vector<128x128xf32>, vector<64x128xf32> -> vector<64x128xf32>
    %158 = vector.broadcast %100 : vector<1x128xf32> to vector<64x128xf32>
    %159 = arith.addf %157, %158 : vector<64x128xf32>
    %160 = math.tanh %159 : vector<64x128xf32>
    %cst_78 = arith.constant dense<0.000000e+00> : vector<128xf32>
    %161 = vector.multi_reduction <add>, %160, %cst_78 [0] : vector<64x128xf32> to vector<128xf32>
    %162 = vector.shape_cast %161 : vector<128xf32> to vector<1x128xf32>
    %cst_79 = arith.constant 6.400000e+01 : f32
    %163 = vector.broadcast %cst_79 : f32 to vector<1x128xf32>
    %164 = arith.divf %162, %163 : vector<1x128xf32>
    %165 = arith.mulf %164, %101 : vector<1x128xf32>
    %cst_80 = arith.constant dense<0.000000e+00> : vector<1xf32>
    %166 = vector.multi_reduction <add>, %165, %cst_80 [1] : vector<1x128xf32> to vector<1xf32>
    %167 = vector.shape_cast %166 : vector<1xf32> to vector<1x1xf32>
    %168 = arith.maximumf %123, %145 : vector<1x1xf32>
    %169 = arith.maximumf %168, %167 : vector<1x1xf32>
    %170 = arith.subf %123, %169 : vector<1x1xf32>
    %171 = math.exp %170 : vector<1x1xf32>
    %172 = arith.subf %145, %169 : vector<1x1xf32>
    %173 = math.exp %172 : vector<1x1xf32>
    %174 = arith.subf %167, %169 : vector<1x1xf32>
    %175 = math.exp %174 : vector<1x1xf32>
    %176 = arith.addf %171, %173 : vector<1x1xf32>
    %177 = arith.addf %176, %175 : vector<1x1xf32>
    %cst_81 = arith.constant 1.000000e+00 : f32
    %178 = vector.broadcast %cst_81 : f32 to vector<1x1xf32>
    %179 = arith.divf %178, %177 : vector<1x1xf32>
    %180 = arith.mulf %171, %179 : vector<1x1xf32>
    %181 = vector.broadcast %180 : vector<1x1xf32> to vector<64x128xf32>
    %182 = arith.mulf %181, %112 : vector<64x128xf32>
    %183 = arith.mulf %173, %179 : vector<1x1xf32>
    %184 = vector.broadcast %183 : vector<1x1xf32> to vector<64x128xf32>
    %185 = arith.mulf %184, %134 : vector<64x128xf32>
    %186 = arith.addf %182, %185 : vector<64x128xf32>
    %187 = arith.mulf %175, %179 : vector<1x1xf32>
    %188 = vector.broadcast %187 : vector<1x1xf32> to vector<64x128xf32>
    %189 = arith.mulf %188, %156 : vector<64x128xf32>
    %190 = arith.addf %186, %189 : vector<64x128xf32>
    %c0_82 = arith.constant 0 : index
    %c0_83 = arith.constant 0 : index
    %191 = vector.load %arg13[%c0_82, %c0_83] : memref<64x128xf32, #tpu.memory_space<vmem>>, vector<64x128xf32>
    tpu.vector_store %arg13[%c0_82, %c0_83], %190 {strides = array<i32>} : memref<64x128xf32, #tpu.memory_space<vmem>>, vector<64x128xf32>,
    return
  }
}

</mosaic_0001>

<bundles_post_ra>
// kernel: tpu_custom_call.1
= control target key start
LH: loop header
LB: loop body
LE: loop exit
PB: predicated region body
PF: predicated region fallthrough
CT: control target
= control target key end

     0   :  { %18 = vsyncpa [#allocation3], 0  ;;  %s5533_s0 = inlined_call_operand.vmem [shape: f32[192,64], index: 0, kind: input, shape index: {}]   ;;  %s5534_s1 = inlined_call_operand.vmem [shape: f32[192,1], index: 1, kind: input, shape index: {}]   ;;  %s5535_s2 = inlined_call_operand.hbm [shape: f32[64,128], index: 2, kind: input, shape index: {}]   ;;  %s5536_s3 = inlined_call_operand.vmem [shape: f32[128,384], index: 3, kind: input, shape index: {}]   ;;  %s5537_s4 = inlined_call_operand.vmem [shape: f32[3,128], index: 4, kind: input, shape index: {}]   ;;  %s5538_s5 = inlined_call_operand.vmem [shape: f32[128,128], index: 5, kind: input, shape index: {}]   ;;  %s5539_s6 = inlined_call_operand.vmem [shape: f32[1,128], index: 6, kind: input, shape index: {}]   ;;  %s5540_s7 = inlined_call_operand.vmem [shape: f32[1,128], index: 7, kind: input, shape index: {}]   ;;  %s5541_s8 = inlined_call_operand.hbm [shape: f32[128,384], index: 8, kind: input, shape index: {}]   ;;  %s5542_s9 = inlined_call_operand.vmem [shape: f32[3,128], index: 9, kind: input, shape index: {}]   ;;  %s5543_s10 = inlined_call_operand.hbm [shape: f32[128,128], index: 10, kind: input, shape index: {}]   ;;  %s5544_s11 = inlined_call_operand.vmem [shape: f32[1,128], index: 11, kind: input, shape index: {}]   ;;  %s5545_s12 = inlined_call_operand.vmem [shape: f32[1,128], index: 12, kind: input, shape index: {}]   ;;  %s5546_s13 = inlined_call_operand.hbm [shape: f32[64,128], index: 13, kind: output, shape index: {}]  }
   0x1   :  { %19 = vsyncpa [#allocation6], 0 }
   0x2   :  { %20 = vsyncpa [#allocation4], 0  ;;  %s4185_s25 = smov [#allocation5]   ;;  %s4091_s29 = scalar_lea.hbm %s5541_s8, 6144 }
   0x3   :  { %s52_s26 = sshll.u32 %s4185_s25, 4  ;;  %p4092_p0 = scmp.ne.s32.totalorder %s5541_s8, %s4091_s29  ;;  %s53_s26 = int_to_ptr.vmem [resolvable:$true] %s52_s26 }
   0x4   :  { %p4095_p1 = scmp.lt.u32.totalorder %s4091_s29, %s5541_s8 }
   0x6   :  { %p4097_p2 = pnand %p4095_p1, %p4092_p0 }
   0x8   :  { %4100 = shalt.err (!%p4097_p2)
}
   0x9   :  { %s4101_s17 = scalar_lea.vmem %s53_s26, 6144  ;;  %p4106_p4 = scmp.lt.s32.totalorder %s53_s26, %s53_s26 }
   0xa   :  { %p4102_p3 = scmp.ne.s32.totalorder %s53_s26, %s4101_s17  ;;  %p4107_p5 = scmp.lt.s32.totalorder %s4101_s17, %s4101_s17 }
   0xc   :  { %p4108_p6 = por %p4107_p5, %p4106_p4 }
   0xe   :  { %p4109_p7 = pnand %p4108_p6, %p4102_p3 }
  0x10   :  { %4112 = shalt.err (!%p4109_p7)
}
  0x11   :  { %s4186_s18 = smov 384   ;;  %s4187_s19 = smov 24  }
  0x12   :  { %58 = dma.hbm_to_vmem [thread:$0]  %s5541_s8, 6144, %s53_s26, [#allocation6], %s4186_s18, %s4186_s18, %s4187_s19  }
  0x13   :  { %s4188_s22 = smov [#allocation2]   ;;  %s4113_s27 = scalar_lea.hbm %s5535_s2, 1024 }
  0x14   :  { %s30_s23 = sshll.u32 %s4188_s22, 4  ;;  %p4114_p8 = scmp.ne.s32.totalorder %s5535_s2, %s4113_s27  ;;  %s31_s23 = int_to_ptr.vmem [resolvable:$true] %s30_s23 }
  0x15   :  { %p4117_p9 = scmp.lt.u32.totalorder %s4113_s27, %s5535_s2 }
  0x17   :  { %p4119_p10 = pnand %p4117_p9, %p4114_p8 }
  0x19   :  { %4122 = shalt.err (!%p4119_p10)
}
  0x1a   :  { %s4123_s15 = scalar_lea.vmem %s31_s23, 1024  ;;  %p4128_p12 = scmp.lt.s32.totalorder %s31_s23, %s31_s23 }
  0x1b   :  { %p4124_p11 = scmp.ne.s32.totalorder %s31_s23, %s4123_s15  ;;  %p4129_p13 = scmp.lt.s32.totalorder %s4123_s15, %s4123_s15 }
  0x1d   :  { %p4130_p0 = por %p4129_p13, %p4128_p12 }
  0x1f   :  { %p4131_p1 = pnand %p4130_p0, %p4124_p11 }
  0x21   :  { %4134 = shalt.err (!%p4131_p1)
}
  0x22   :  { %s4189_s8 = smov 128   ;;  %s4190_s26 = smov 8  }
  0x23   :  { %36 = dma.hbm_to_vmem [thread:$0]  %s5535_s2, 1024, %s31_s23, [#allocation3], %s4189_s8, %s4189_s8, %s4190_s26  }
  0x24   :  { %s4191_s18 = smov [#allocation7]   ;;  %s4135_s22 = scalar_lea.hbm %s5543_s10, 2048 }
  0x25   :  { %s66_s19 = sshll.u32 %s4191_s18, 4  ;;  %p4136_p2 = scmp.ne.s32.totalorder %s5543_s10, %s4135_s22  ;;  %s67_s19 = int_to_ptr.vmem [resolvable:$true] %s66_s19 }
  0x26   :  { %p4139_p3 = scmp.lt.u32.totalorder %s4135_s22, %s5543_s10 }
  0x28   :  { %p4141_p4 = pnand %p4139_p3, %p4136_p2 }
  0x2a   :  { %4144 = shalt.err (!%p4141_p4)
}
  0x2b   :  { %s4145_s29 = scalar_lea.vmem %s67_s19, 2048  ;;  %p4150_p6 = scmp.lt.s32.totalorder %s67_s19, %s67_s19 }
  0x2c   :  { %p4146_p5 = scmp.ne.s32.totalorder %s67_s19, %s4145_s29  ;;  %p4151_p7 = scmp.lt.s32.totalorder %s4145_s29, %s4145_s29 }
  0x2e   :  { %p4152_p8 = por %p4151_p7, %p4150_p6 }
  0x30   :  { %p4153_p9 = pnand %p4152_p8, %p4146_p5 }
  0x32   :  { %4156 = shalt.err (!%p4153_p9)
}
  0x33   :  { %72 = dma.hbm_to_vmem [thread:$0]  %s5543_s10, 2048, %s67_s19, [#allocation6], %s4189_s8, %s4189_s8, %s4190_s26  }
  0x34   :  { %4179 = dma.done.wait [#allocation3], 1024  }
  0x35   :  { %4180 = vsyncadd [#allocation3], 4294966272 }
  0x36   :  { %4181 = dma.done.wait [#allocation6], 8192  }
  0x37   :  { %4182 = vsyncadd [#allocation6], 4294959104  ;;  %v5569_v0 = vmov 0.0   ;;  %v95_v1 = vld [vmem:[%s5536_s3 + $0x8] sm:$0xff]  ;;  %v98_v2 = vld [vmem:[%s5536_s3 + $0x20] sm:$0xff]  ;;  %vm387_vm0 = vcmask 523264  }
  0x38   :  { %206 = vmatprep.mubr.f32.mxu0 %v5569_v0  ;;  %v94_v3 = vld [vmem:[%s5536_s3] sm:$0xff]  ;;  %v3527_v4 = vpack.c.bf16 %v98_v2, %v95_v1  ;;  %v97_v5 = vld [vmem:[%s5536_s3 + $0x18] sm:$0xff]  ;;  %v104_v7 = vld [vmem:[%s5536_s3 + $0x50] sm:$0xff]  ;;  %vm728_vm1 = vcmask 1040384  }
  0x39   :  { %v101_v6 = vld [vmem:[%s5536_s3 + $0x38] sm:$0xff]  ;;  %v3529_v8 = vpack.c.bf16 %v97_v5, %v94_v3  ;;  %v100_v10 = vld [vmem:[%s5536_s3 + $0x30] sm:$0xff]  ;;  %v103_v11 = vld [vmem:[%s5536_s3 + $0x48] sm:$0xff] }
  0x3a   :  { %v3531_v9 = vpack.c.bf16 %v104_v7, %v101_v6  ;;  %v107_v12 = vld [vmem:[%s5536_s3 + $0x68] sm:$0xff]  ;;  %3528 = vmatprep.subr.bf16.mxu0 %v3527_v4  ;;  %v110_v13 = vld [vmem:[%s5536_s3 + $0x80] sm:$0xff]  ;;  %v3533_v14 = vpack.c.bf16 %v103_v11, %v100_v10  ;;  %v109_v17 = vld [vmem:[%s5536_s3 + $0x78] sm:$0xff] }
  0x3b   :  { %3530 = vmatpush1.bf16.msra.mxu0 %v3529_v8  ;;  %v3535_v15 = vpack.c.bf16 %v110_v13, %v107_v12  ;;  %v106_v16 = vld [vmem:[%s5536_s3 + $0x60] sm:$0xff]  ;;  %v113_v18 = vld [vmem:[%s5536_s3 + $0x98] sm:$0xff]  ;;  %v116_v19 = vld [vmem:[%s5536_s3 + $0xb0] sm:$0xff] }
  0x3c   :  { %3532 = vmatprep.subr.bf16.mxu0 %v3531_v9  ;;  %v3537_v20 = vpack.c.bf16 %v109_v17, %v106_v16  ;;  %v3539_v21 = vpack.c.bf16 %v116_v19, %v113_v18  ;;  %v112_v22 = vld [vmem:[%s5536_s3 + $0x90] sm:$0xff]  ;;  %v115_v23 = vld [vmem:[%s5536_s3 + $0xa8] sm:$0xff]  ;;  %v122_v25 = vld [vmem:[%s5536_s3 + $0xe0] sm:$0xff] }
  0x3d   :  { %v119_v24 = vld [vmem:[%s5536_s3 + $0xc8] sm:$0xff]  ;;  %v4362_v26 = vld [vmem:[#allocation2] sm:$0xff]  ;;  %v3541_v28 = vpack.c.bf16 %v115_v23, %v112_v22  ;;  %v121_v29 = vld [vmem:[%s5536_s3 + $0xd8] sm:$0xff] }
  0x3e   :  { %v118_v27 = vld [vmem:[%s5536_s3 + $0xc0] sm:$0xff]  ;;  %3039 = vmatprep.mubr.f32.mxu1 %v4362_v26  ;;  %v96_v30 = vld [vmem:[%s5536_s3 + $0x10] sm:$0xff]  ;;  %v99_v31 = vld [vmem:[%s5536_s3 + $0x28] sm:$0xff]  ;;  %v3543_v32 = vpack.c.bf16 %v122_v25, %v119_v24 }
  0x3f   :  { %3534 = vmatpush1.bf16.msra.mxu0 %v3533_v14  ;;  %v125_v33 = vld [vmem:[%s5536_s3 + $0xf8] sm:$0xff]  ;;  %v3559_v34 = vpack.c.bf16 %v99_v31, %v96_v30  ;;  %v102_v35 = vld [vmem:[%s5536_s3 + $0x40] sm:$0xff]  ;;  %v128_v37 = vld [vmem:[%s5536_s3 + $0x110] sm:$0xff]  ;;  %v3545_v41 = vpack.c.bf16 %v121_v29, %v118_v27 }
  0x40   :  { %3536 = vmatprep.subr.bf16.mxu0 %v3535_v15  ;;  %v105_v36 = vld [vmem:[%s5536_s3 + $0x58] sm:$0xff]  ;;  %v108_v39 = vld [vmem:[%s5536_s3 + $0x70] sm:$0xff]  ;;  %v111_v40 = vld [vmem:[%s5536_s3 + $0x88] sm:$0xff]  ;;  %v3547_v42 = vpack.c.bf16 %v128_v37, %v125_v33 }
  0x41   :  { %v3563_v38 = vpack.c.bf16 %v105_v36, %v102_v35  ;;  %3560 = vmatprep.subr.bf16.mxu1 %v3559_v34  ;;  %v124_v43 = vld [vmem:[%s5536_s3 + $0xf0] sm:$0xff]  ;;  %v127_v44 = vld [vmem:[%s5536_s3 + $0x108] sm:$0xff]  ;;  %v3567_v46 = vpack.c.bf16 %v111_v40, %v108_v39  ;;  %v134_v47 = vld [vmem:[%s5536_s3 + $0x140] sm:$0xff] }
  0x42   :  { %3562 = vmatpush3.bf16.msra.mxu1 %v3559_v34  ;;  %v131_v45 = vld [vmem:[%s5536_s3 + $0x128] sm:$0xff]  ;;  %v114_v48 = vld [vmem:[%s5536_s3 + $0xa0] sm:$0xff]  ;;  %v117_v49 = vld [vmem:[%s5536_s3 + $0xb8] sm:$0xff]  ;;  %v3549_v50 = vpack.c.bf16 %v127_v44, %v124_v43 }
  0x43   :  { %3538 = vmatpush1.bf16.msra.mxu0 %v3537_v20  ;;  %3564 = vmatprep.subr.bf16.mxu1 %v3563_v38  ;;  %v3551_v51 = vpack.c.bf16 %v134_v47, %v131_v45  ;;  %v130_v52 = vld [vmem:[%s5536_s3 + $0x120] sm:$0xff]  ;;  %v133_v53 = vld [vmem:[%s5536_s3 + $0x138] sm:$0xff]  ;;  %v3571_v55 = vpack.c.bf16 %v117_v49, %v114_v48  ;;  %v140_v56 = vld [vmem:[%s5536_s3 + $0x170] sm:$0xff]  ;;  %v4193_v20 = vmov 0  }
  0x44   :  { %3540 = vmatprep.subr.bf16.mxu0 %v3539_v21  ;;  %v137_v54 = vld [vmem:[%s5536_s3 + $0x158] sm:$0xff]  ;;  %v120_v57 = vld [vmem:[%s5536_s3 + $0xd0] sm:$0xff]  ;;  %v123_v58 = vld [vmem:[%s5536_s3 + $0xe8] sm:$0xff]  ;;  %v3553_v59 = vpack.c.bf16 %v133_v53, %v130_v52  ;;  %3953 = vset.pattern.permute.xlu0 %v4193_v20 }
  0x45   :  { %v3555_v60 = vpack.c.bf16 %v140_v56, %v137_v54  ;;  %v136_v61 = vld [vmem:[%s5536_s3 + $0x150] sm:$0xff]  ;;  %v139_v62 = vld [vmem:[%s5536_s3 + $0x168] sm:$0xff]  ;;  %v3575_v63 = vpack.c.bf16 %v123_v58, %v120_v57  ;;  %v126_v1 = vld [vmem:[%s5536_s3 + $0x100] sm:$0xff]  ;;  %3954 = vset.pattern.permute.xlu1 %v4193_v20 }
  0x46   :  { %3566 = vmatpush3.bf16.msra.mxu1 %v3563_v38  ;;  %v129_v2 = vld [vmem:[%s5536_s3 + $0x118] sm:$0xff]  ;;  %v3557_v3 = vpack.c.bf16 %v139_v62, %v136_v61  ;;  %v132_v5 = vld [vmem:[%s5536_s3 + $0x130] sm:$0xff]  ;;  %v135_v6 = vld [vmem:[%s5536_s3 + $0x148] sm:$0xff] }
  0x47   :  { %3542 = vmatpush1.bf16.msra.mxu0 %v3541_v28  ;;  %3568 = vmatprep.subr.bf16.mxu1 %v3567_v46  ;;  %v3579_v4 = vpack.c.bf16 %v129_v2, %v126_v1  ;;  %v3583_v7 = vpack.c.bf16 %v135_v6, %v132_v5  ;;  %v138_v8 = vld [vmem:[%s5536_s3 + $0x160] sm:$0xff]  ;;  %v141_v9 = vld [vmem:[%s5536_s3 + $0x178] sm:$0xff]  ;;  %v87_v10 = vld [vmem:[#allocation2 + $0x8] sm:$0xff] }
  0x48   :  { %3544 = vmatprep.subr.bf16.mxu0 %v3543_v32  ;;  %v3587_v11 = vpack.c.bf16 %v141_v9, %v138_v8  ;;  %v88_v12 = vld [vmem:[#allocation2 + $0x10] sm:$0xff]  ;;  %v89_v13 = vld [vmem:[#allocation2 + $0x18] sm:$0xff]  ;;  %v90_v14 = vld [vmem:[#allocation2 + $0x20] sm:$0xff] }
  0x49   :  { %v91_v15 = vld [vmem:[#allocation2 + $0x28] sm:$0xff]  ;;  %v92_v16 = vld [vmem:[#allocation2 + $0x30] sm:$0xff]  ;;  %v93_v17 = vld [vmem:[#allocation2 + $0x38] sm:$0xff] }
  0x4a   :  { %3570 = vmatpush3.bf16.msra.mxu1 %v3567_v46  ;;  %v379_v18 = vld [vmem:[%s5533_s0] sm:$0xff]  ;;  %v518_v21 = vld [vmem:[%s5534_s1 + $0x8] sm:$0xff]  ;;  %v519_v22 = vld [vmem:[%s5534_s1 + $0x10] sm:$0xff] }
  0x4b   :  { %3546 = vmatpush1.bf16.msra.mxu0 %v3545_v41  ;;  %3572 = vmatprep.subr.bf16.mxu1 %v3571_v55  ;;  %v517_v19 = vld [vmem:[%s5534_s1] sm:$0xff]  ;;  %v520_v24 = vld [vmem:[%s5534_s1 + $0x18] sm:$0xff]  ;;  %v522_v25 = vld [vmem:[%s5534_s1 + $0x28] sm:$0xff] }
  0x4c   :  { %3548 = vmatprep.subr.bf16.mxu0 %v3547_v42  ;;  %527 = vperm.xlu0 %3953, %v517_v19   ;;  %v521_v23 = vld [vmem:[%s5534_s1 + $0x20] sm:$0xff]  ;;  %v524_v27 = vld [vmem:[%s5534_s1 + $0x38] sm:$0xff]  ;;  %v870_v29 = vld [vmem:[%s5534_s1 + $0x48] sm:$0xff] }
  0x4d   :  { %537 = vperm.xlu1 %3954, %v519_v22   ;;  %v869_v28 = vld [vmem:[%s5534_s1 + $0x40] sm:$0xff]  ;;  %v362_v32 = vld [vmem:[%s5538_s5 + $0x8] sm:$0xff]  ;;  %v871_v35 = vld [vmem:[%s5534_s1 + $0x50] sm:$0xff] }
  0x4e   :  { %3574 = vmatpush3.bf16.msra.mxu1 %v3571_v55  ;;  %v1213_v30 = vld [vmem:[%s5534_s1 + $0x80] sm:$0xff]  ;;  %v1214_v33 = vld [vmem:[%s5534_s1 + $0x88] sm:$0xff]  ;;  %v363_v36 = vld [vmem:[%s5538_s5 + $0x10] sm:$0xff] }
  0x4f   :  { %3550 = vmatpush1.bf16.msra.mxu0 %v3549_v50  ;;  %3576 = vmatprep.subr.bf16.mxu1 %v3575_v63  ;;  %v361_v31 = vld [vmem:[%s5538_s5] sm:$0xff]  ;;  %v364_v37 = vld [vmem:[%s5538_s5 + $0x18] sm:$0xff]  ;;  %v1215_v40 = vld [vmem:[%s5534_s1 + $0x90] sm:$0xff] }
  0x50   :  { %3552 = vmatprep.subr.bf16.mxu0 %v3551_v51  ;;  %532 = vperm.xlu0 %3953, %v518_v21   ;;  %v4509_v34 = vpack.c.bf16 %v362_v32, %v361_v31  ;;  %v872_v38 = vld [vmem:[%s5534_s1 + $0x58] sm:$0xff]  ;;  %v4525_v39 = vpack.c.bf16 %v364_v37, %v363_v36  ;;  %v365_v41 = vld [vmem:[%s5538_s5 + $0x20] sm:$0xff]  ;;  %v366_v42 = vld [vmem:[%s5538_s5 + $0x28] sm:$0xff] }
  0x51   :  { %542 = vperm.xlu1 %3954, %v520_v24   ;;  %v1216_v43 = vld [vmem:[%s5534_s1 + $0x98] sm:$0xff]  ;;  %v4541_v44 = vpack.c.bf16 %v366_v42, %v365_v41  ;;  %v873_v45 = vld [vmem:[%s5534_s1 + $0x60] sm:$0xff]  ;;  %v367_v46 = vld [vmem:[%s5538_s5 + $0x30] sm:$0xff] }
  0x52   :  { %3578 = vmatpush3.bf16.msra.mxu1 %v3575_v63  ;;  %v368_v47 = vld [vmem:[%s5538_s5 + $0x38] sm:$0xff]  ;;  %v874_v48 = vld [vmem:[%s5534_s1 + $0x68] sm:$0xff]  ;;  %v1217_v50 = vld [vmem:[%s5534_s1 + $0xa0] sm:$0xff] }
  0x53   :  { %3554 = vmatpush1.bf16.msra.mxu0 %v3553_v59  ;;  %3580 = vmatprep.subr.bf16.mxu1 %v3579_v4  ;;  %v4557_v49 = vpack.c.bf16 %v368_v47, %v367_v46  ;;  %v369_v51 = vld [vmem:[%s5538_s5 + $0x40] sm:$0xff]  ;;  %v370_v52 = vld [vmem:[%s5538_s5 + $0x48] sm:$0xff]  ;;  %v875_v55 = vld [vmem:[%s5534_s1 + $0x70] sm:$0xff] }
  0x54   :  { %3556 = vmatprep.subr.bf16.mxu0 %v3555_v60  ;;  %547 = vperm.xlu0 %3953, %v521_v23   ;;  %v1218_v53 = vld [vmem:[%s5534_s1 + $0xa8] sm:$0xff]  ;;  %v4573_v54 = vpack.c.bf16 %v370_v52, %v369_v51  ;;  %v371_v56 = vld [vmem:[%s5538_s5 + $0x50] sm:$0xff]  ;;  %v372_v57 = vld [vmem:[%s5538_s5 + $0x58] sm:$0xff] }
  0x55   :  { %552 = vperm.xlu1 %3954, %v522_v25   ;;  %v876_v58 = vld [vmem:[%s5534_s1 + $0x78] sm:$0xff]  ;;  %v4589_v59 = vpack.c.bf16 %v372_v57, %v371_v56  ;;  %v1219_v60 = vld [vmem:[%s5534_s1 + $0xb0] sm:$0xff]  ;;  %v380_v36 = vld [vmem:[%s5533_s0 + $0x8] sm:$0xff] }
  0x56   :  { %3582 = vmatpush3.bf16.msra.mxu1 %v3579_v4  ;;  %v1220_v61 = vld [vmem:[%s5534_s1 + $0xb8] sm:$0xff]  ;;  %v381_v37 = vld [vmem:[%s5533_s0 + $0x10] sm:$0xff]  ;;  %v384_v41 = vld [vmem:[%s5533_s0 + $0x28] sm:$0xff] }
  0x57   :  { %3558 = vmatpush1.bf16.msra.mxu0 %v3557_v3  ;;  %3584 = vmatprep.subr.bf16.mxu1 %v3583_v7  ;;  %v385_v42 = vld [vmem:[%s5533_s0 + $0x30] sm:$0xff]  ;;  %v733_v46 = vld [vmem:[%s5533_s0 + $0x48] sm:$0xff] }
  0x58   :  { %3608 = vmatprep.subr.bf16.mxu0 %v4509_v34  ;;  %v734_v47 = vld [vmem:[%s5533_s0 + $0x50] sm:$0xff]  ;;  %v737_v51 = vld [vmem:[%s5533_s0 + $0x68] sm:$0xff] }
  0x59   :  { %562 = vperm.xlu1 %3954, %v524_v27   ;;  %v738_v52 = vld [vmem:[%s5533_s0 + $0x70] sm:$0xff]  ;;  %v1077_v56 = vld [vmem:[%s5533_s0 + $0x88] sm:$0xff] }
  0x5a   :  { %207 = vmatmul.mubr.f32.vlgmr.msra.gmra.mrb[0].mxu0 %v4362_v26  ;;  %3586 = vmatpush3.bf16.msra.mxu1 %v3583_v7  ;;  %v523_v26 = vld [vmem:[%s5534_s1 + $0x30] sm:$0xff] }
  0x5b   :  { %212 = vmatprep.mubr.f32.mxu0 %v5569_v0  ;;  %3588 = vmatprep.subr.bf16.mxu1 %v3587_v11  ;;  %v1078_v57 = vld [vmem:[%s5533_s0 + $0x90] sm:$0xff] }
  0x5c   :  { %557 = vperm.xlu0 %3953, %v523_v26   ;;  %3610 = vmatpush3.bf16.msra.mxu0 %v4509_v34 }
  0x5d   :  { %884 = vperm.xlu1 %3954, %v870_v29   ;;  %3612 = vmatprep.subr.bf16.mxu0 %v4525_v39 }
  0x5e   :  { %213 = vmatmul.mubr.f32.gmra.mrb[2].mxu0 %v87_v10  ;;  %3590 = vmatpush3.bf16.msra.mxu1 %v3587_v11 }
  0x5f   :  { %218 = vmatprep.mubr.f32.mxu0 %v5569_v0 }
  0x60   :  { %879 = vperm.xlu0 %3953, %v869_v28   ;;  %3614 = vmatpush3.bf16.msra.mxu0 %v4525_v39 }
  0x61   :  { %3040 = vmatmul.mubr.f32.vlgmr.msra.gmra.mrb[0].mxu1 %v87_v10  ;;  %1228 = vperm.xlu1 %3954, %v1214_v33  }
  0x62   :  { %219 = vmatmul.mubr.f32.gmra.mrb[4].mxu0 %v88_v12  ;;  %3042 = vmatprep.mubr.f32.mxu1 %v88_v12 }
  0x63   :  { %224 = vmatprep.mubr.f32.mxu0 %v5569_v0  ;;  %3616 = vmatprep.subr.bf16.mxu0 %v4541_v44 }
  0x64   :  { %1223 = vperm.xlu0 %3953, %v1213_v30   ;;  %3618 = vmatpush3.bf16.msra.mxu0 %v4541_v44 }
  0x65   :  { %3043 = vmatmul.mubr.f32.gmra.mrb[2].mxu1 %v89_v13  ;;  %894 = vperm.xlu1 %3954, %v872_v38   ;;  %v382_v38 = vld [vmem:[%s5533_s0 + $0x18] sm:$0xff] }
  0x66   :  { %225 = vmatmul.mubr.f32.gmra.mrb[6].mxu0 %v89_v13  ;;  %3045 = vmatprep.mubr.f32.mxu1 %v90_v14 }
  0x67   :  { %230 = vmatprep.mubr.f32.mxu0 %v5569_v0  ;;  %3620 = vmatprep.subr.bf16.mxu0 %v4557_v49 }
  0x68   :  { %889 = vperm.xlu0 %3953, %v871_v35   ;;  %3622 = vmatpush3.bf16.msra.mxu0 %v4557_v49 }
  0x69   :  { %3046 = vmatmul.mubr.f32.gmra.mrb[4].mxu1 %v91_v15  ;;  %1238 = vperm.xlu1 %3954, %v1216_v43   ;;  %v386_v43 = vld [vmem:[%s5533_s0 + $0x38] sm:$0xff] }
  0x6a   :  { %231 = vmatmul.mubr.f32.gmra.mrb[8].mxu0 %v90_v14  ;;  %3048 = vmatprep.mubr.f32.mxu1 %v92_v16 }
  0x6b   :  { %236 = vmatprep.mubr.f32.mxu0 %v5569_v0  ;;  %3624 = vmatprep.subr.bf16.mxu0 %v4573_v54 }
  0x6c   :  { %1233 = vperm.xlu0 %3953, %v1215_v40   ;;  %3626 = vmatpush3.bf16.msra.mxu0 %v4573_v54  ;;  %v383_v40 = vld [vmem:[%s5533_s0 + $0x20] sm:$0xff] }
  0x6d   :  { %3049 = vmatmul.mubr.f32.gmra.mrb[6].mxu1 %v93_v17  ;;  %904 = vperm.xlu1 %3954, %v874_v48   ;;  %v735_v48 = vld [vmem:[%s5533_s0 + $0x58] sm:$0xff] }
  0x6e   :  { %237 = vmatmul.mubr.f32.gmra.mrb[10].mxu0 %v91_v15  ;;  %3067 = vmatprep.mubr.msk.f32.mxu1 %vm387_vm0, %v379_v18 }
  0x6f   :  { %242 = vmatprep.mubr.f32.mxu0 %v5569_v0  ;;  %3628 = vmatprep.subr.bf16.mxu0 %v4589_v59 }
  0x70   :  { %899 = vperm.xlu0 %3953, %v873_v45   ;;  %3630 = vmatpush3.bf16.msra.mxu0 %v4589_v59  ;;  %v732_v45 = vld [vmem:[%s5533_s0 + $0x40] sm:$0xff] }
  0x71   :  { %1248 = vperm.xlu1 %3954, %v1218_v53   ;;  %v739_v53 = vld [vmem:[%s5533_s0 + $0x78] sm:$0xff] }
  0x72   :  { %243 = vmatmul.mubr.f32.gmra.mrb[12].mxu0 %v92_v16 }
  0x73   :  { %248 = vmatprep.mubr.f32.mxu0 %v5569_v0 }
  0x74   :  { %1243 = vperm.xlu0 %3953, %v1217_v50   ;;  %v736_v50 = vld [vmem:[%s5533_s0 + $0x60] sm:$0xff] }
  0x75   :  { %914 = vperm.xlu1 %3954, %v876_v58   ;;  %v1079_v58 = vld [vmem:[%s5533_s0 + $0x98] sm:$0xff] }
  0x76   :  { %249 = vmatmul.mubr.f32.gmra.mrb[14].mxu0 %v93_v17 }
  0x78   :  { %909 = vperm.xlu0 %3953, %v875_v55   ;;  %v1076_v55 = vld [vmem:[%s5533_s0 + $0x80] sm:$0xff] }
  0x79   :  { %1258 = vperm.xlu1 %3954, %v1220_v61   ;;  %v1081_v61 = vld [vmem:[%s5533_s0 + $0xa8] sm:$0xff] }
  0x7c   :  { %1253 = vperm.xlu0 %3953, %v1219_v60   ;;  %v1080_v60 = vld [vmem:[%s5533_s0 + $0xa0] sm:$0xff] }
 0x12d   :  { %v208_v62 = vpop.f32.mrb[0].mxu0 }
 0x12e   :  { %v210_v63 = vpop.f32.mrb[1].mxu0 }
 0x131   :  { %v214_v1 = vpop.f32.mrb[2].mxu0 }
 0x132   :  { %v3591_v2 = vpack.c.bf16 %v214_v1, %v208_v62  ;;  %v216_v3 = vpop.f32.mrb[3].mxu0  ;;  %v1082_v62 = vld [vmem:[%s5533_s0 + $0xb0] sm:$0xff]  ;;  %v373_v1 = vld [vmem:[%s5538_s5 + $0x60] sm:$0xff] }
 0x133   :  { %v3639_v4 = vpack.c.bf16 %v216_v3, %v210_v63  ;;  %v1083_v63 = vld [vmem:[%s5533_s0 + $0xb8] sm:$0xff] }
 0x134   :  { %3592 = vmatprep.subr.bf16.mxu1 %v3591_v2  ;;  %v3041_v8 = vpop.f32.mrb[0].mxu1 }
 0x135   :  { %v220_v5 = vpop.f32.mrb[4].mxu0  ;;  %3594 = vmatpush3.bf16.msra.mxu1 %v3591_v2  ;;  %v321_v11 = vpop.f32.mrb[1].mxu1  ;;  %v374_v2 = vld [vmem:[%s5538_s5 + $0x68] sm:$0xff] }
 0x136   :  { %v222_v6 = vpop.f32.mrb[5].mxu0  ;;  %v3687_v13 = vpack.c.bf16 %v3041_v8, %v321_v11  ;;  %v4709_v3 = vpack.c.bf16 %v374_v2, %v373_v1  ;;  %v4730_v8 = vpop.permute.xlu0 %527  ;;  %v573_v11 = vlaneseq }
 0x138   :  { %v3044_v15 = vpop.f32.mrb[2].mxu1  ;;  %3632 = vmatprep.subr.bf16.mxu0 %v4709_v3 }
 0x139   :  { %v226_v7 = vpop.f32.mrb[6].mxu0  ;;  %v331_v17 = vpop.f32.mrb[3].mxu1  ;;  %3634 = vmatpush3.bf16.msra.mxu0 %v4709_v3 }
 0x13a   :  { %v3595_v9 = vpack.c.bf16 %v226_v7, %v220_v5  ;;  %v228_v10 = vpop.f32.mrb[7].mxu0  ;;  %v3691_v18 = vpack.c.bf16 %v3044_v15, %v331_v17  ;;  %v376_v5 = vld [vmem:[%s5538_s5 + $0x78] sm:$0xff]  ;;  %v4728_v7 = vpop.permute.xlu1 %537  ;;  %v4750_v17 = vld [vmem:[%s5537_s4] sm:$0x7] }
 0x13b   :  { %v3643_v12 = vpack.c.bf16 %v228_v10, %v222_v6  ;;  %v4734_v10 = vpop.permute.xlu0 %532 }
 0x13c   :  { %3596 = vmatprep.subr.bf16.mxu1 %v3595_v9  ;;  %v3047_v20 = vpop.f32.mrb[4].mxu1 }
 0x13d   :  { %v232_v14 = vpop.f32.mrb[8].mxu0  ;;  %3598 = vmatpush3.bf16.msra.mxu1 %v3595_v9  ;;  %v341_v23 = vpop.f32.mrb[5].mxu1 }
 0x13e   :  { %v234_v16 = vpop.f32.mrb[9].mxu0  ;;  %v3695_v25 = vpack.c.bf16 %v3047_v20, %v341_v23  ;;  %v4732_v9 = vpop.permute.xlu1 %542 }
 0x140   :  { %v3050_v27 = vpop.f32.mrb[6].mxu1 }
 0x141   :  { %v238_v19 = vpop.f32.mrb[10].mxu0  ;;  %v351_v29 = vpop.f32.mrb[7].mxu1 }
 0x142   :  { %v3599_v21 = vpack.c.bf16 %v238_v19, %v232_v14  ;;  %v240_v22 = vpop.f32.mrb[11].mxu0  ;;  %v3699_v30 = vpack.c.bf16 %v3050_v27, %v351_v29  ;;  %v4740_v14 = vshrl.u32 %v573_v11, 7 }
 0x143   :  { %v3647_v24 = vpack.c.bf16 %v240_v22, %v234_v16 }
 0x144   :  { %3600 = vmatprep.subr.bf16.mxu1 %v3599_v21  ;;  %v4743_v15 = vsub.s32 0, %v4740_v14 }
 0x145   :  { %v244_v26 = vpop.f32.mrb[12].mxu0  ;;  %3602 = vmatpush3.bf16.msra.mxu1 %v3599_v21 }
 0x146   :  { %v246_v28 = vpop.f32.mrb[13].mxu0  ;;  %v576_v19 = vrot.slane %v4750_v17, %v4743_v15 }
 0x149   :  { %v250_v31 = vpop.f32.mrb[14].mxu0 }
 0x14a   :  { %v3603_v32 = vpack.c.bf16 %v250_v31, %v244_v26  ;;  %v252_v33 = vpop.f32.mrb[15].mxu0 }
 0x14b   :  { %v3651_v35 = vpack.c.bf16 %v252_v33, %v246_v28 }
 0x14c   :  { %3604 = vmatprep.subr.bf16.mxu1 %v3603_v32 }
 0x14d   :  { %3606 = vmatpush3.bf16.msra.mxu1 %v3603_v32 }
 0x14e   :  { %3640 = vmatprep.subr.bf16.mxu1 %v3639_v4 }
 0x150   :  { %3068 = vmatmul.mubr.msk.f32.vlgmr.msra.gmra.mrb[8].mxu1 %vm387_vm0, %v380_v36 }
 0x151   :  { %3642 = vmatpush3.bf16.msra.mxu1 %v3639_v4  ;;  %3070 = vmatprep.mubr.msk.f32.mxu1 %vm387_vm0, %v381_v37  ;;  %v375_v4 = vld [vmem:[%s5538_s5 + $0x70] sm:$0xff] }
 0x152   :  { %3644 = vmatprep.subr.bf16.mxu1 %v3643_v12  ;;  %v4721_v6 = vpack.c.bf16 %v376_v5, %v375_v4 }
 0x154   :  { %3071 = vmatmul.mubr.msk.f32.gmra.mrb[10].mxu1 %vm387_vm0, %v382_v38  ;;  %3636 = vmatprep.subr.bf16.mxu0 %v4721_v6 }
 0x155   :  { %3646 = vmatpush3.bf16.msra.mxu1 %v3643_v12  ;;  %3073 = vmatprep.mubr.msk.f32.mxu1 %vm387_vm0, %v383_v40  ;;  %v4736_v12 = vpop.permute.xlu1 %552 }
 0x156   :  { %3648 = vmatprep.subr.bf16.mxu1 %v3647_v24  ;;  %3638 = vmatpush3.bf16.msra.mxu0 %v4721_v6 }
 0x157   :  { %3656 = vmatprep.subr.bf16.mxu0 %v4509_v34 }
 0x158   :  { %3074 = vmatmul.mubr.msk.f32.gmra.mrb[12].mxu1 %vm387_vm0, %v384_v41 }
 0x159   :  { %3650 = vmatpush3.bf16.msra.mxu1 %v3647_v24  ;;  %3076 = vmatprep.mubr.msk.f32.mxu1 %vm387_vm0, %v385_v42  ;;  %v4745_v16 = vpop.permute.xlu1 %562 }
 0x15a   :  { %3652 = vmatprep.subr.bf16.mxu1 %v3651_v35 }
 0x15c   :  { %3077 = vmatmul.mubr.msk.f32.gmra.mrb[14].mxu1 %vm387_vm0, %v386_v43 }
 0x15d   :  { %3654 = vmatpush3.bf16.msra.mxu1 %v3651_v35  ;;  %3139 = vmatprep.mubr.msk.f32.mxu1 %vm387_vm0, %v732_v45  ;;  %v4757_v23 = vpop.permute.xlu1 %884 }
 0x15e   :  { %3688 = vmatprep.subr.bf16.mxu1 %v3687_v13 }
 0x160   :  { %3140 = vmatmul.mubr.msk.f32.vlgmr.msra.gmra.mrb[16].mxu1 %vm387_vm0, %v733_v46 }
 0x161   :  { %3690 = vmatpush3.bf16.msra.mxu1 %v3687_v13  ;;  %3142 = vmatprep.mubr.msk.f32.mxu1 %vm387_vm0, %v734_v47  ;;  %v4738_v13 = vpop.permute.xlu0 %547  ;;  %v4772_v36 = vpop.permute.xlu1 %1228 }
 0x162   :  { %3692 = vmatprep.subr.bf16.mxu1 %v3691_v18  ;;  %5596 = vst [vmem:[#allocation12_spill] sm:$0xff] %v4772_v36 }
 0x164   :  { %3143 = vmatmul.mubr.msk.f32.gmra.mrb[18].mxu1 %vm387_vm0, %v735_v48 }
 0x165   :  { %3694 = vmatpush3.bf16.msra.mxu1 %v3691_v18  ;;  %3145 = vmatprep.mubr.msk.f32.mxu1 %vm387_vm0, %v736_v50  ;;  %v4752_v18 = vpop.permute.xlu0 %557 }
 0x166   :  { %3696 = vmatprep.subr.bf16.mxu1 %v3695_v25 }
 0x168   :  { %3146 = vmatmul.mubr.msk.f32.gmra.mrb[20].mxu1 %vm387_vm0, %v737_v51  ;;  %v5548_v51 = vsub.s32 1, %v4740_v14 }
 0x169   :  { %3698 = vmatpush3.bf16.msra.mxu1 %v3695_v25  ;;  %3148 = vmatprep.mubr.msk.f32.mxu1 %vm387_vm0, %v738_v52  ;;  %v4760_v25 = vpop.permute.xlu0 %879 }
 0x16a   :  { %3700 = vmatprep.subr.bf16.mxu1 %v3699_v30 }
 0x16c   :  { %3149 = vmatmul.mubr.msk.f32.gmra.mrb[22].mxu1 %vm387_vm0, %v739_v53 }
 0x16d   :  { %3702 = vmatpush3.bf16.msra.mxu1 %v3699_v30  ;;  %3211 = vmatprep.mubr.msk.f32.mxu1 %vm387_vm0, %v1076_v55  ;;  %v4778_v40 = vpop.permute.xlu0 %1223 }
 0x16e   :  { %3704 = vmatprep.subr.bf16.mxu1 %v4509_v34  ;;  %5597 = vst [vmem:[#allocation13_spill] sm:$0xff] %v4778_v40 }
 0x170   :  { %3212 = vmatmul.mubr.msk.f32.vlgmr.msra.gmra.mrb[24].mxu1 %vm387_vm0, %v1077_v56 }
 0x171   :  { %3214 = vmatprep.mubr.msk.f32.mxu1 %vm387_vm0, %v1078_v57  ;;  %3706 = vmatpush3.bf16.msra.mxu1 %v4509_v34  ;;  %v4803_v57 = vpop.permute.xlu0 %889 }
 0x172   :  { %3708 = vmatprep.subr.bf16.mxu1 %v4525_v39 }
 0x174   :  { %3215 = vmatmul.mubr.msk.f32.gmra.mrb[26].mxu1 %vm387_vm0, %v1079_v58 }
 0x175   :  { %3217 = vmatprep.mubr.msk.f32.mxu1 %vm387_vm0, %v1080_v60  ;;  %3710 = vmatpush3.bf16.msra.mxu1 %v4525_v39 }
 0x176   :  { %3712 = vmatprep.subr.bf16.mxu1 %v4541_v44 }
 0x178   :  { %3218 = vmatmul.mubr.msk.f32.gmra.mrb[28].mxu1 %vm387_vm0, %v1081_v61 }
 0x179   :  { %3220 = vmatprep.mubr.msk.f32.mxu1 %vm387_vm0, %v1082_v62  ;;  %3714 = vmatpush3.bf16.msra.mxu1 %v4541_v44 }
 0x17a   :  { %3716 = vmatprep.subr.bf16.mxu1 %v4557_v49 }
 0x17c   :  { %3221 = vmatmul.mubr.msk.f32.gmra.mrb[30].mxu1 %vm387_vm0, %v1083_v63  ;;  %v4816_v63 = vrot.slane %v4750_v17, %v5548_v51 }
 0x17d   :  { %3718 = vmatpush3.bf16.msra.mxu1 %v4557_v49 }
 0x17e   :  { %3720 = vmatprep.subr.bf16.mxu1 %v4573_v54 }
 0x181   :  { %3722 = vmatpush3.bf16.msra.mxu1 %v4573_v54 }
 0x182   :  { %3724 = vmatprep.subr.bf16.mxu1 %v4589_v59 }
 0x185   :  { %3726 = vmatpush3.bf16.msra.mxu1 %v4589_v59 }
 0x186   :  { %3728 = vmatprep.subr.bf16.mxu1 %v4709_v3 }
 0x189   :  { %3730 = vmatpush3.bf16.msra.mxu1 %v4709_v3 }
 0x18a   :  { %3732 = vmatprep.subr.bf16.mxu1 %v4721_v6 }
 0x18d   :  { %3734 = vmatpush3.bf16.msra.mxu1 %v4721_v6 }
 0x223   :  { %v3069_v20 = vpop.f32.mrb[8].mxu1 }
 0x224   :  { %v566_v21 = vmul.f32 %v3069_v20, %v4734_v10  ;;  %v478_v22 = vpop.f32.mrb[9].mxu1  ;;  %v4832_v20 = vpop.permute.xlu0 %1233 }
 0x225   :  { %v565_v24 = vmul.f32 %v4730_v8, %v478_v22  ;;  %5599 = vst [vmem:[#allocation15_spill] sm:$0xff] %v4832_v20 }
 0x226   :  { %v4762_v26 = vadd.f32 %v576_v19, %v566_v21 }
 0x227   :  { %v4764_v27 = vadd.f32 %v576_v19, %v565_v24  ;;  %v3072_v28 = vpop.f32.mrb[10].mxu1 }
 0x228   :  { %v568_v29 = vmul.f32 %v3072_v28, %v4732_v9  ;;  %v488_v30 = vpop.f32.mrb[11].mxu1  ;;  %v5561_v33 = vmax.f32 %v4762_v26, 0.0 }
 0x229   :  { %v5574_v31 = vmax.f32 %v4764_v27, 0.0  ;;  %v567_v32 = vmul.f32 %v4728_v7, %v488_v30  ;;  %v5547_v30 = vsub.s32 2, %v4740_v14 }
 0x22a   :  { %v4770_v35 = vadd.f32 %v576_v19, %v568_v29  ;;  %v4844_v29 = vpop.permute.xlu0 %899 }
 0x22b   :  { %v4774_v37 = vadd.f32 %v576_v19, %v567_v32  ;;  %v3075_v38 = vpop.f32.mrb[12].mxu1  ;;  %3111 = vmatprep.mubr.f32.mxu0 %v5574_v31  ;;  %5601 = vst [vmem:[#allocation17_spill] sm:$0xff] %v4844_v29 }
 0x22c   :  { %v570_v41 = vmul.f32 %v3075_v38, %v4736_v12  ;;  %v498_v42 = vpop.f32.mrb[13].mxu1  ;;  %3112 = vmatmul.mubr.f32.vlgmr.msra.gmra.mrb[16].mxu0 %v5561_v33  ;;  %v5553_v46 = vmax.f32 %v4770_v35, 0.0 }
 0x22d   :  { %v5556_v43 = vmax.f32 %v4774_v37, 0.0  ;;  %v569_v45 = vmul.f32 %v4738_v13, %v498_v42  ;;  %3658 = vmatpush3.bf16.msra.mxu0 %v4509_v34  ;;  %v4798_v34 = vpop.permute.xlu1 %894 }
 0x22e   :  { %v4787_v47 = vadd.f32 %v576_v19, %v570_v41  ;;  %3660 = vmatprep.subr.bf16.mxu0 %v4525_v39  ;;  %v4854_v41 = vrot.slane %v4750_v17, %v5547_v30 }
 0x22f   :  { %v4790_v48 = vadd.f32 %v576_v19, %v569_v45  ;;  %v3078_v50 = vpop.f32.mrb[14].mxu1  ;;  %3114 = vmatprep.mubr.f32.mxu0 %v5556_v43 }
 0x230   :  { %v572_v52 = vmul.f32 %v3078_v50, %v4745_v16  ;;  %v508_v53 = vpop.f32.mrb[15].mxu1  ;;  %3115 = vmatmul.mubr.f32.gmra.mrb[18].mxu0 %v5553_v46  ;;  %v5551_v58 = vmax.f32 %v4787_v47, 0.0  ;;  %v4859_v50 = vpop.permute.xlu0 %1243 }
 0x231   :  { %v5552_v55 = vmax.f32 %v4790_v48, 0.0  ;;  %v571_v56 = vmul.f32 %v4752_v18, %v508_v53  ;;  %3662 = vmatpush3.bf16.msra.mxu0 %v4525_v39  ;;  %v4825_v5 = vpop.permute.xlu1 %1238  ;;  %5603 = vst [vmem:[#allocation19_spill] sm:$0xff] %v4859_v50 }
 0x232   :  { %v4806_v60 = vadd.f32 %v576_v19, %v572_v52  ;;  %3664 = vmatprep.subr.bf16.mxu0 %v4541_v44  ;;  %5598 = vst [vmem:[#allocation14_spill] sm:$0xff] %v4825_v5 }
 0x233   :  { %v4809_v61 = vadd.f32 %v576_v19, %v571_v56  ;;  %3117 = vmatprep.mubr.f32.mxu0 %v5552_v55  ;;  %v3141_v62 = vpop.f32.mrb[16].mxu1 }
 0x234   :  { %3118 = vmatmul.mubr.f32.gmra.mrb[20].mxu0 %v5551_v58  ;;  %v830_v39 = vpop.f32.mrb[17].mxu1  ;;  %v5549_v4 = vmax.f32 %v4806_v60, 0.0  ;;  %v4888_v30 = vpop.permute.xlu0 %909 }
 0x235   :  { %v5550_v1 = vmax.f32 %v4809_v61, 0.0  ;;  %v917_v2 = vmul.f32 %v4760_v25, %v830_v39  ;;  %3666 = vmatpush3.bf16.msra.mxu0 %v4541_v44  ;;  %v4841_v28 = vpop.permute.xlu1 %904  ;;  %5605 = vst [vmem:[#allocation21_spill] sm:$0xff] %v4888_v30 }
 0x236   :  { %3668 = vmatprep.subr.bf16.mxu0 %v4557_v49  ;;  %5600 = vst [vmem:[#allocation16_spill] sm:$0xff] %v4841_v28 }
 0x237   :  { %v4828_v11 = vadd.f32 %v4816_v63, %v917_v2  ;;  %3120 = vmatprep.mubr.f32.mxu0 %v5550_v1  ;;  %v3144_v19 = vpop.f32.mrb[18].mxu1 }
 0x238   :  { %3121 = vmatmul.mubr.f32.gmra.mrb[22].mxu0 %v5549_v4  ;;  %v840_v21 = vpop.f32.mrb[19].mxu1 }
 0x239   :  { %v5573_v44 = vmax.f32 %v4828_v11, 0.0  ;;  %3670 = vmatpush3.bf16.msra.mxu0 %v4557_v49  ;;  %v918_v49 = vmul.f32 %v3141_v62, %v4757_v23  ;;  %v919_v42 = vmul.f32 %v4803_v57, %v840_v21 }
 0x23a   :  { %3672 = vmatprep.subr.bf16.mxu0 %v4573_v54 }
 0x23b   :  { %v3147_v22 = vpop.f32.mrb[20].mxu1  ;;  %3183 = vmatprep.mubr.f32.mxu0 %v5573_v44  ;;  %v4866_v62 = vadd.f32 %v4816_v63, %v918_v49  ;;  %v4873_v39 = vadd.f32 %v4816_v63, %v919_v42 }
 0x23c   :  { %v850_v24 = vpop.f32.mrb[21].mxu1 }
 0x23d   :  { %3674 = vmatpush3.bf16.msra.mxu0 %v4573_v54  ;;  %v4856_v54 = vpop.permute.xlu1 %1248  ;;  %v921_v2 = vmul.f32 %v4844_v29, %v850_v24  ;;  %v5559_v24 = vmax.f32 %v4866_v62, 0.0 }
 0x23e   :  { %3676 = vmatprep.subr.bf16.mxu0 %v4589_v59  ;;  %5602 = vst [vmem:[#allocation18_spill] sm:$0xff] %v4856_v54 }
 0x23f   :  { %v3150_v32 = vpop.f32.mrb[22].mxu1  ;;  %v4898_v4 = vadd.f32 %v4816_v63, %v921_v2 }
 0x240   :  { %v860_v38 = vpop.f32.mrb[23].mxu1 }
 0x241   :  { %3678 = vmatpush3.bf16.msra.mxu0 %v4589_v59  ;;  %v920_v59 = vmul.f32 %v3144_v19, %v4798_v34 }
 0x242   :  { %3680 = vmatprep.subr.bf16.mxu0 %v4709_v3 }
 0x243   :  { %v3213_v45 = vpop.f32.mrb[24].mxu1  ;;  %v4883_v49 = vadd.f32 %v4816_v63, %v920_v59  ;;  %v5557_v59 = vmax.f32 %v4873_v39, 0.0 }
 0x244   :  { %v1262_v52 = vmul.f32 %v3213_v45, %v4772_v36  ;;  %v1174_v53 = vpop.f32.mrb[25].mxu1 }
 0x245   :  { %3682 = vmatpush3.bf16.msra.mxu0 %v4709_v3  ;;  %v1261_v56 = vmul.f32 %v4778_v40, %v1174_v53  ;;  %v4880_v53 = vpop.permute.xlu1 %914  ;;  %v5560_v2 = vmax.f32 %v4883_v49, 0.0 }
 0x246   :  { %v4869_v17 = vadd.f32 %v4854_v41, %v1262_v52  ;;  %3684 = vmatprep.subr.bf16.mxu0 %v4721_v6  ;;  %5604 = vst [vmem:[#allocation20_spill] sm:$0xff] %v4880_v53  ;;  %v924_v55 = vmul.f32 %v3150_v32, %v4880_v53  ;;  %v4935_v32 = vpop.permute.xlu0 %1253 }
 0x247   :  { %v4877_v21 = vadd.f32 %v4854_v41, %v1261_v56  ;;  %v3216_v19 = vpop.f32.mrb[26].mxu1  ;;  %v922_v56 = vmul.f32 %v3147_v22, %v4841_v28  ;;  %5607 = vst [vmem:[#allocation23_spill] sm:$0xff] %v4935_v32 }
 0x248   :  { %v1264_v3 = vmul.f32 %v3216_v19, %v4825_v5  ;;  %v1184_v45 = vpop.f32.mrb[27].mxu1  ;;  %v5554_v19 = vmax.f32 %v4869_v17, 0.0 }
 0x249   :  { %v5555_v52 = vmax.f32 %v4877_v21, 0.0  ;;  %3686 = vmatpush3.bf16.msra.mxu0 %v4721_v6  ;;  %v1263_v42 = vmul.f32 %v4832_v20, %v1184_v45  ;;  %v923_v6 = vmul.f32 %v4888_v30, %v860_v38  ;;  %v4917_v58 = vadd.f32 %v4816_v63, %v922_v56 }
 0x24a   :  { %v4894_v51 = vadd.f32 %v4854_v41, %v1264_v3 }
 0x24b   :  { %v4902_v45 = vadd.f32 %v4854_v41, %v1263_v42  ;;  %v3219_v1 = vpop.f32.mrb[28].mxu1  ;;  %3255 = vmatprep.mubr.f32.mxu1 %v5555_v52  ;;  %v5572_v52 = vmax.f32 %v4898_v4, 0.0  ;;  %v4928_v43 = vadd.f32 %v4816_v63, %v923_v6 }
 0x24c   :  { %3184 = vmatmul.mubr.f32.vlgmr.msra.gmra.mrb[24].mxu0 %v5559_v24  ;;  %v1266_v22 = vmul.f32 %v3219_v1, %v4856_v54  ;;  %v1194_v3 = vpop.f32.mrb[29].mxu1  ;;  %3256 = vmatmul.mubr.f32.vlgmr.msra.gmra.mrb[32].mxu1 %v5554_v19  ;;  %v5562_v1 = vmax.f32 %v4894_v51, 0.0  ;;  %v4924_v19 = vpop.permute.xlu1 %1258  ;;  %v4948_v24 = vadd.f32 %v4816_v63, %v924_v55 }
 0x24d   :  { %v5558_v38 = vmax.f32 %v4902_v45, 0.0  ;;  %3186 = vmatprep.mubr.f32.mxu0 %v5557_v59  ;;  %v1265_v42 = vmul.f32 %v4859_v50, %v1194_v3  ;;  %5606 = vst [vmem:[#allocation22_spill] sm:$0xff] %v4924_v19  ;;  %v5567_v33 = vmax.f32 %v4928_v43, 0.0 }
 0x24e   :  { %v4922_v46 = vadd.f32 %v4854_v41, %v1266_v22  ;;  %v5566_v63 = vmax.f32 %v4948_v24, 0.0 }
 0x24f   :  { %v4931_v59 = vadd.f32 %v4854_v41, %v1265_v42  ;;  %v3222_v3 = vpop.f32.mrb[30].mxu1  ;;  %3258 = vmatprep.mubr.f32.mxu1 %v5558_v38  ;;  %v5571_v38 = vmax.f32 %v4917_v58, 0.0 }
 0x250   :  { %3187 = vmatmul.mubr.f32.gmra.mrb[26].mxu0 %v5560_v2  ;;  %v1268_v56 = vmul.f32 %v3222_v3, %v4924_v19  ;;  %v1204_v22 = vpop.f32.mrb[31].mxu1  ;;  %3259 = vmatmul.mubr.f32.gmra.mrb[34].mxu1 %v5562_v1  ;;  %v5563_v2 = vmax.f32 %v4922_v46, 0.0 }
 0x251   :  { %v5564_v6 = vmax.f32 %v4931_v59, 0.0  ;;  %3189 = vmatprep.mubr.f32.mxu0 %v5572_v52  ;;  %v1267_v42 = vmul.f32 %v4935_v32, %v1204_v22 }
 0x252   :  { %v4952_v3 = vadd.f32 %v4854_v41, %v1268_v56 }
 0x253   :  { %v4956_v1 = vadd.f32 %v4854_v41, %v1267_v42  ;;  %3261 = vmatprep.mubr.f32.mxu1 %v5564_v6  ;;  %v4979_v41 = vld [vmem:[%s5539_s6] ss:$0 sm:$0xff] }
 0x254   :  { %3190 = vmatmul.mubr.f32.gmra.mrb[28].mxu0 %v5571_v38  ;;  %3262 = vmatmul.mubr.f32.gmra.mrb[36].mxu1 %v5563_v2  ;;  %v5568_v56 = vmax.f32 %v4952_v3, 0.0 }
 0x255   :  { %v5565_v55 = vmax.f32 %v4956_v1, 0.0  ;;  %3192 = vmatprep.mubr.f32.mxu0 %v5567_v33 }
 0x257   :  { %3264 = vmatprep.mubr.f32.mxu1 %v5565_v55 }
 0x258   :  { %3193 = vmatmul.mubr.f32.gmra.mrb[30].mxu0 %v5566_v63  ;;  %3265 = vmatmul.mubr.f32.gmra.mrb[38].mxu1 %v5568_v56 }
 0x259   :  { %1602 = vmatprep.mubr.f32.mxu0 %v5569_v0 }
 0x2ff   :  { %v3113_v22 = vpop.f32.mrb[16].mxu0 }
 0x300   :  { %v671_v42 = vadd.f32 %v3113_v22, %v4979_v41  ;;  %v665_v2 = vpop.f32.mrb[17].mxu0 }
 0x301   :  { %v666_v6 = vadd.f32 %v4979_v41, %v665_v2 }
 0x302   :  { %3955 = vtanh.f32 %v671_v42 }
 0x303   :  { %3957 = vtanh.f32 %v666_v6  ;;  %v3116_v55 = vpop.f32.mrb[18].mxu0 }
 0x304   :  { %v675_v63 = vpop.f32.mrb[19].mxu0  ;;  %v681_v33 = vadd.f32 %v3116_v55, %v4979_v41 }
 0x305   :  { %v676_v56 = vadd.f32 %v4979_v41, %v675_v63 }
 0x307   :  { %3959 = vtanh.f32 %v676_v56  ;;  %v3119_v0 = vpop.f32.mrb[20].mxu0 }
 0x308   :  { %v685_v38 = vpop.f32.mrb[21].mxu0  ;;  %3961 = vtanh.f32 %v681_v33  ;;  %v691_v52 = vadd.f32 %v3119_v0, %v4979_v41 }
 0x309   :  { %v686_v44 = vadd.f32 %v4979_v41, %v685_v38 }
 0x30b   :  { %3963 = vtanh.f32 %v686_v44  ;;  %v3122_v22 = vpop.f32.mrb[22].mxu0 }
 0x30c   :  { %v3956_v31 = vpop.eup %3955  ;;  %v695_v2 = vpop.f32.mrb[23].mxu0  ;;  %3965 = vtanh.f32 %v691_v52  ;;  %v701_v6 = vadd.f32 %v3122_v22, %v4979_v41 }
 0x30d   :  { %v3958_v42 = vpop.eup %3957  ;;  %v696_v55 = vadd.f32 %v4979_v41, %v695_v2 }
 0x30e   :  { %v712_v32 = vadd.f32 %v3958_v42, %v3956_v31 }
 0x30f   :  { %3967 = vtanh.f32 %v696_v55 }
 0x310   :  { %3969 = vtanh.f32 %v701_v6 }
 0x311   :  { %v3960_v63 = vpop.eup %3959 }
 0x312   :  { %v713_v56 = vadd.f32 %v3960_v63, %v712_v32  ;;  %v3962_v33 = vpop.eup %3961 }
 0x314   :  { %v714_v19 = vadd.f32 %v3962_v33, %v713_v56 }
 0x315   :  { %v3964_v0 = vpop.eup %3963 }
 0x316   :  { %v715_v50 = vadd.f32 %v3964_v0, %v714_v19  ;;  %v3966_v38 = vpop.eup %3965 }
 0x318   :  { %v716_v44 = vadd.f32 %v3966_v38, %v715_v50 }
 0x319   :  { %v3968_v54 = vpop.eup %3967 }
 0x31a   :  { %v717_v20 = vadd.f32 %v3968_v54, %v716_v44  ;;  %v3970_v5 = vpop.eup %3969 }
 0x31c   :  { %v718_v40 = vadd.f32 %v3970_v5, %v717_v20 }
 0x31e   :  { %v719_v52 = vrot.slane %v718_v40, 4 }
 0x31f   :  { %v3185_v36 = vpop.f32.mrb[24].mxu0  ;;  %v3257_v22 = vpop.f32.mrb[32].mxu1 }
 0x320   :  { %v1017_v2 = vadd.f32 %v3185_v36, %v4979_v41  ;;  %v1011_v31 = vpop.f32.mrb[25].mxu0  ;;  %v1361_v42 = vadd.f32 %v3257_v22, %v4979_v41  ;;  %v1355_v6 = vpop.f32.mrb[33].mxu1  ;;  %v720_v32 = vadd.f32 %v719_v52, %v718_v40 }
 0x321   :  { %v1012_v55 = vadd.f32 %v4979_v41, %v1011_v31  ;;  %v1356_v19 = vadd.f32 %v4979_v41, %v1355_v6 }
 0x322   :  { %3971 = vtanh.f32 %v1017_v2  ;;  %v721_v50 = vrot.slane %v720_v32, 2 }
 0x323   :  { %3973 = vtanh.f32 %v1012_v55  ;;  %v3188_v54 = vpop.f32.mrb[26].mxu0  ;;  %v3260_v63 = vpop.f32.mrb[34].mxu1  ;;  %v5003_v55 = vld [vmem:[%s5540_s7] sm:$0x1] }
 0x324   :  { %3975 = vtanh.f32 %v1361_v42  ;;  %v1027_v5 = vadd.f32 %v3188_v54, %v4979_v41  ;;  %v1021_v20 = vpop.f32.mrb[27].mxu0  ;;  %v1365_v56 = vpop.f32.mrb[35].mxu1  ;;  %v722_v36 = vadd.f32 %v721_v50, %v720_v32  ;;  %v1371_v0 = vadd.f32 %v3260_v63, %v4979_v41 }
 0x325   :  { %3977 = vtanh.f32 %v1356_v19  ;;  %v1022_v33 = vadd.f32 %v4979_v41, %v1021_v20  ;;  %v1366_v40 = vadd.f32 %v4979_v41, %v1365_v56 }
 0x326   :  { %v723_v38 = vrot.slane %v722_v36, 1 }
 0x327   :  { %3979 = vtanh.f32 %v1022_v33  ;;  %v3191_v44 = vpop.f32.mrb[28].mxu0  ;;  %v3263_v52 = vpop.f32.mrb[36].mxu1 }
 0x328   :  { %3981 = vtanh.f32 %v1027_v5  ;;  %v1037_v22 = vadd.f32 %v3191_v44, %v4979_v41  ;;  %v1031_v2 = vpop.f32.mrb[29].mxu0  ;;  %v1375_v31 = vpop.f32.mrb[37].mxu1  ;;  %v724_v42 = vadd.f32 %v723_v38, %v722_v36  ;;  %v1381_v19 = vadd.f32 %v3263_v52, %v4979_v41 }
 0x329   :  { %3983 = vtanh.f32 %v1366_v40  ;;  %v1032_v6 = vadd.f32 %v4979_v41, %v1031_v2  ;;  %v1376_v32 = vadd.f32 %v4979_v41, %v1375_v31 }
 0x32a   :  { %3985 = vtanh.f32 %v1371_v0  ;;  %v726_v50 = vmul.f32 0.015625, %v724_v42 }
 0x32b   :  { %3987 = vtanh.f32 %v1032_v6  ;;  %v3194_v54 = vpop.f32.mrb[30].mxu0  ;;  %v3266_v63 = vpop.f32.mrb[38].mxu1 }
 0x32c   :  { %v3972_v5 = vpop.eup %3971  ;;  %3989 = vtanh.f32 %v1037_v22  ;;  %v1047_v20 = vadd.f32 %v3194_v54, %v4979_v41  ;;  %v1041_v56 = vpop.f32.mrb[31].mxu0  ;;  %v727_v33 = vmul.f32 %v726_v50, %v5003_v55  ;;  %v1391_v22 = vadd.f32 %v3266_v63, %v4979_v41 }
 0x32d   :  { %v1385_v36 = vpop.f32.mrb[39].mxu1  ;;  %v3974_v40 = vpop.eup %3973  ;;  %3991 = vtanh.f32 %v1376_v32  ;;  %v1042_v38 = vadd.f32 %v4979_v41, %v1041_v56 }
 0x32e   :  { %v1386_v0 = vadd.f32 %v4979_v41, %v1385_v36  ;;  %v3976_v44 = vpop.eup %3975  ;;  %v1058_v52 = vadd.f32 %v3974_v40, %v3972_v5  ;;  %3993 = vtanh.f32 %v1381_v19  ;;  %v729_v2 = vsel %vm728_vm1, %v727_v33, 0.0 }
 0x32f   :  { %v3978_v31 = vpop.eup %3977  ;;  %3995 = vtanh.f32 %v1042_v38  ;;  %730 = vadd.xlane.f32.xlu0 %v729_v2 }
 0x330   :  { %v1402_v42 = vadd.f32 %v3978_v31, %v3976_v44  ;;  %3997 = vtanh.f32 %v1047_v20 }
 0x331   :  { %v3980_v6 = vpop.eup %3979  ;;  %3999 = vtanh.f32 %v1386_v0 }
 0x332   :  { %v3982_v50 = vpop.eup %3981  ;;  %v1059_v32 = vadd.f32 %v3980_v6, %v1058_v52  ;;  %4001 = vtanh.f32 %v1391_v22 }
 0x333   :  { %v3984_v54 = vpop.eup %3983 }
 0x334   :  { %v3986_v56 = vpop.eup %3985  ;;  %v1403_v36 = vadd.f32 %v3984_v54, %v1402_v42  ;;  %v1060_v30 = vadd.f32 %v3982_v50, %v1059_v32 }
 0x335   :  { %v3988_v5 = vpop.eup %3987 }
 0x336   :  { %v3990_v19 = vpop.eup %3989  ;;  %v1061_v40 = vadd.f32 %v3988_v5, %v1060_v30  ;;  %v1404_v33 = vadd.f32 %v3986_v56, %v1403_v36 }
 0x337   :  { %v3992_v53 = vpop.eup %3991 }
 0x338   :  { %v3994_v38 = vpop.eup %3993  ;;  %v1405_v29 = vadd.f32 %v3992_v53, %v1404_v33  ;;  %v1062_v41 = vadd.f32 %v3990_v19, %v1061_v40 }
 0x339   :  { %v3996_v63 = vpop.eup %3995 }
 0x33a   :  { %v3998_v44 = vpop.eup %3997  ;;  %v1063_v20 = vadd.f32 %v3996_v63, %v1062_v41  ;;  %v1406_v2 = vadd.f32 %v3994_v38, %v1405_v29 }
 0x33b   :  { %v4000_v0 = vpop.eup %3999 }
 0x33c   :  { %v1407_v31 = vadd.f32 %v4000_v0, %v1406_v2  ;;  %v1064_v52 = vadd.f32 %v3998_v44, %v1063_v20  ;;  %v4002_v6 = vpop.eup %4001  ;;  %v1494_v20 = vld [vmem:[#allocation5 + $0x20] sm:$0xff] }
 0x33d   :  { %v1490_v0 = vld [vmem:[#allocation5] sm:$0xff] }
 0x33e   :  { %v1065_v22 = vrot.slane %v1064_v52, 4  ;;  %v1408_v28 = vadd.f32 %v4002_v6, %v1407_v31  ;;  %v1493_v31 = vld [vmem:[#allocation5 + $0x18] sm:$0xff] }
 0x33f   :  { %v3737_v6 = vpack.c.bf16 %v1493_v31, %v1490_v0  ;;  %v1508_v31 = vld [vmem:[#allocation5 + $0x90] sm:$0xff] }
 0x340   :  { %v1066_v42 = vadd.f32 %v1065_v22, %v1064_v52  ;;  %v1409_v50 = vrot.slane %v1408_v28, 4  ;;  %v1492_v52 = vld [vmem:[#allocation5 + $0x10] sm:$0xff]  ;;  %v1495_v22 = vld [vmem:[#allocation5 + $0x28] sm:$0xff] }
 0x342   :  { %v1067_v32 = vrot.slane %v1066_v42, 2  ;;  %v1410_v54 = vadd.f32 %v1409_v50, %v1408_v28  ;;  %v1491_v28 = vld [vmem:[#allocation5 + $0x8] sm:$0xff]  ;;  %v1497_v50 = vld [vmem:[#allocation5 + $0x38] sm:$0xff] }
 0x343   :  { %v3735_v2 = vpack.c.bf16 %v1494_v20, %v1491_v28  ;;  %v1509_v20 = vld [vmem:[#allocation5 + $0x98] sm:$0xff] }
 0x344   :  { %v1068_v30 = vadd.f32 %v1067_v32, %v1066_v42  ;;  %v1411_v56 = vrot.slane %v1410_v54, 2  ;;  %v3767_v42 = vpack.c.bf16 %v1495_v22, %v1492_v52  ;;  %v1500_v32 = vld [vmem:[#allocation5 + $0x50] sm:$0xff]  ;;  %v1511_v52 = vld [vmem:[#allocation5 + $0xa8] sm:$0xff] }
 0x345   :  { %3736 = vmatprep.subr.bf16.mxu0 %v3735_v2  ;;  %v1512_v2 = vld [vmem:[#allocation5 + $0xb0] sm:$0xff]  ;;  %v3749_v22 = vpack.c.bf16 %v1511_v52, %v1508_v31  ;;  %v1526_v52 = vld [vmem:[#allocation5 + $0x120] sm:$0xff] }
 0x346   :  { %v1069_v36 = vrot.slane %v1068_v30, 1  ;;  %v1412_v5 = vadd.f32 %v1411_v56, %v1410_v54  ;;  %3738 = vmatpush1.bf16.msra.mxu0 %v3737_v6  ;;  %3768 = vmatprep.subr.bf16.mxu1 %v3767_v42  ;;  %v3739_v54 = vpack.c.bf16 %v1500_v32, %v1497_v50  ;;  %v1498_v56 = vld [vmem:[#allocation5 + $0x40] sm:$0xff]  ;;  %v3747_v0 = vpack.c.bf16 %v1512_v2, %v1509_v20  ;;  %v1515_v32 = vld [vmem:[#allocation5 + $0xc8] sm:$0xff] }
 0x347   :  { %3770 = vmatpush3.bf16.msra.mxu1 %v3767_v42  ;;  %v1510_v6 = vld [vmem:[#allocation5 + $0xa0] sm:$0xff]  ;;  %v1513_v42 = vld [vmem:[#allocation5 + $0xb8] sm:$0xff]  ;;  %v1527_v2 = vld [vmem:[#allocation5 + $0x128] sm:$0xff] }
 0x348   :  { %v1070_v53 = vadd.f32 %v1069_v36, %v1068_v30  ;;  %v1413_v19 = vrot.slane %v1412_v5, 1  ;;  %v1499_v30 = vld [vmem:[#allocation5 + $0x48] sm:$0xff]  ;;  %3740 = vmatprep.subr.bf16.mxu0 %v3739_v54  ;;  %v3779_v50 = vpack.c.bf16 %v1513_v42, %v1510_v6  ;;  %v1518_v54 = vld [vmem:[#allocation5 + $0xe0] sm:$0xff]  ;;  %v1529_v6 = vld [vmem:[#allocation5 + $0x138] sm:$0xff] }
 0x349   :  { %v3761_v42 = vpack.c.bf16 %v1529_v6, %v1526_v52 }
 0x34a   :  { %v1071_v40 = vmul.f32 0.015625, %v1070_v53  ;;  %v1414_v33 = vadd.f32 %v1413_v19, %v1412_v5  ;;  %v1501_v5 = vld [vmem:[#allocation5 + $0x58] sm:$0xff]  ;;  %v1503_v19 = vld [vmem:[#allocation5 + $0x68] sm:$0xff] }
 0x34b   :  { %v3771_v53 = vpack.c.bf16 %v1501_v5, %v1498_v56  ;;  %v1517_v56 = vld [vmem:[#allocation5 + $0xd8] sm:$0xff] }
 0x34c   :  { %v1072_v29 = vmul.f32 %v1071_v40, %v5003_v55  ;;  %v1415_v38 = vmul.f32 0.015625, %v1414_v33  ;;  %v1506_v40 = vld [vmem:[#allocation5 + $0x80] sm:$0xff] }
 0x34d   :  { %3772 = vmatprep.subr.bf16.mxu1 %v3771_v53  ;;  %v3743_v33 = vpack.c.bf16 %v1506_v40, %v1503_v19  ;;  %v1521_v40 = vld [vmem:[#allocation5 + $0xf8] sm:$0xff] }
 0x34e   :  { %v1073_v41 = vsel %vm728_vm1, %v1072_v29, 0.0  ;;  %v1416_v63 = vmul.f32 %v1415_v38, %v5003_v55  ;;  %v1496_v55 = vld [vmem:[#allocation5 + $0x30] sm:$0xff]  ;;  %v1502_v29 = vld [vmem:[#allocation5 + $0x60] sm:$0xff]  ;;  %v1505_v38 = vld [vmem:[#allocation5 + $0x78] sm:$0xff]  ;;  %3774 = vmatpush3.bf16.msra.mxu1 %v3771_v53 }
 0x34f   :  { %1074 = vadd.xlane.f32.xlu1 %v1073_v41  ;;  %v3741_v36 = vpack.c.bf16 %v1499_v30, %v1496_v55  ;;  %v1504_v41 = vld [vmem:[#allocation5 + $0x70] sm:$0xff]  ;;  %v3751_v55 = vpack.c.bf16 %v1518_v54, %v1515_v32  ;;  %v1514_v30 = vld [vmem:[#allocation5 + $0xc0] sm:$0xff]  ;;  %v1519_v53 = vld [vmem:[#allocation5 + $0xe8] sm:$0xff] }
 0x350   :  { %v1417_v44 = vsel %vm728_vm1, %v1416_v63, 0.0  ;;  %v3745_v63 = vpack.c.bf16 %v1505_v38, %v1502_v29  ;;  %v3753_v5 = vpack.c.bf16 %v1517_v56, %v1514_v30  ;;  %v1520_v38 = vld [vmem:[#allocation5 + $0xf0] sm:$0xff]  ;;  %v1533_v32 = vld [vmem:[#allocation5 + $0x158] sm:$0xff] }
 0x351   :  { %1418 = vadd.xlane.f32.xlu0 %v1417_v44  ;;  %3742 = vmatpush1.bf16.msra.mxu0 %v3741_v36  ;;  %v1507_v44 = vld [vmem:[#allocation5 + $0x88] sm:$0xff]  ;;  %v1516_v36 = vld [vmem:[#allocation5 + $0xd0] sm:$0xff] }
 0x352   :  { %3744 = vmatprep.subr.bf16.mxu0 %v3743_v33  ;;  %v3775_v28 = vpack.c.bf16 %v1507_v44, %v1504_v41  ;;  %v3783_v19 = vpack.c.bf16 %v1519_v53, %v1516_v36  ;;  %v1524_v33 = vld [vmem:[#allocation5 + $0x110] sm:$0xff]  ;;  %v1523_v41 = vld [vmem:[#allocation5 + $0x108] sm:$0xff] }
 0x353   :  { %v3755_v29 = vpack.c.bf16 %v1524_v33, %v1521_v40  ;;  %v3757_v44 = vpack.c.bf16 %v1523_v41, %v1520_v38  ;;  %v1536_v54 = vld [vmem:[#allocation5 + $0x170] sm:$0xff]  ;;  %v1535_v36 = vld [vmem:[#allocation5 + $0x168] sm:$0xff]  ;;  %v1757_v33 = vld [vmem:[#allocation7] sm:$0xff] }
 0x354   :  { %3776 = vmatprep.subr.bf16.mxu1 %v3775_v28  ;;  %v3763_v30 = vpack.c.bf16 %v1536_v54, %v1533_v32  ;;  %v1532_v56 = vld [vmem:[#allocation5 + $0x150] sm:$0xff] }
 0x355   :  { %3746 = vmatpush1.bf16.msra.mxu0 %v3745_v63  ;;  %3778 = vmatpush3.bf16.msra.mxu1 %v3775_v28  ;;  %v1522_v63 = vld [vmem:[#allocation5 + $0x100] sm:$0xff]  ;;  %v1525_v28 = vld [vmem:[#allocation5 + $0x118] sm:$0xff]  ;;  %v3765_v53 = vpack.c.bf16 %v1535_v36, %v1532_v56 }
 0x356   :  { %3748 = vmatprep.subr.bf16.mxu0 %v3747_v0  ;;  %3780 = vmatprep.subr.bf16.mxu1 %v3779_v50  ;;  %v3787_v20 = vpack.c.bf16 %v1525_v28, %v1522_v63  ;;  %v1530_v0 = vld [vmem:[#allocation5 + $0x140] sm:$0xff] }
 0x357   :  { %v3759_v31 = vpack.c.bf16 %v1530_v0, %v1527_v2 }
 0x359   :  { %3750 = vmatpush1.bf16.msra.mxu0 %v3749_v22  ;;  %3782 = vmatpush3.bf16.msra.mxu1 %v3779_v50  ;;  %v1528_v22 = vld [vmem:[#allocation5 + $0x130] sm:$0xff]  ;;  %v1531_v50 = vld [vmem:[#allocation5 + $0x148] sm:$0xff] }
 0x35a   :  { %3752 = vmatprep.subr.bf16.mxu0 %v3751_v55  ;;  %3784 = vmatprep.subr.bf16.mxu1 %v3783_v19  ;;  %v3791_v55 = vpack.c.bf16 %v1531_v50, %v1528_v22 }
 0x35d   :  { %3754 = vmatpush1.bf16.msra.mxu0 %v3753_v5  ;;  %3786 = vmatpush3.bf16.msra.mxu1 %v3783_v19  ;;  %v1534_v5 = vld [vmem:[#allocation5 + $0x160] sm:$0xff]  ;;  %v1537_v19 = vld [vmem:[#allocation5 + $0x178] sm:$0xff] }
 0x35e   :  { %3756 = vmatprep.subr.bf16.mxu0 %v3755_v29  ;;  %3788 = vmatprep.subr.bf16.mxu1 %v3787_v20  ;;  %v3795_v40 = vpack.c.bf16 %v1537_v19, %v1534_v5  ;;  %v1758_v29 = vld [vmem:[#allocation7 + $0x8] sm:$0xff] }
 0x35f   :  { %v5016_v38 = vpack.c.bf16 %v1758_v29, %v1757_v33  ;;  %v5608_v33 = vmax.f32 %v4764_v27, 0.0 }
 0x361   :  { %3758 = vmatpush1.bf16.msra.mxu0 %v3757_v44  ;;  %3790 = vmatpush3.bf16.msra.mxu1 %v3787_v20 }
 0x362   :  { %3760 = vmatprep.subr.bf16.mxu0 %v3759_v31  ;;  %3792 = vmatprep.subr.bf16.mxu1 %v3791_v55 }
 0x365   :  { %3762 = vmatpush1.bf16.msra.mxu0 %v3761_v42  ;;  %3794 = vmatpush3.bf16.msra.mxu1 %v3791_v55 }
 0x366   :  { %3764 = vmatprep.subr.bf16.mxu0 %v3763_v30  ;;  %3796 = vmatprep.subr.bf16.mxu1 %v3795_v40 }
 0x369   :  { %3766 = vmatpush1.bf16.msra.mxu0 %v3765_v53  ;;  %3798 = vmatpush3.bf16.msra.mxu1 %v3795_v40 }
 0x36a   :  { %3816 = vmatprep.subr.bf16.mxu1 %v5016_v38 }
 0x3bc   :  { %v731_v41 = vpop.xlane.xlu0 %730 }
 0x3dc   :  { %v1075_v63 = vpop.xlane.xlu1 %1074 }
 0x3dd   :  { %v1420_v44 = vmax.f32 %v731_v41, %v1075_v63 }
 0x3de   :  { %v1419_v28 = vpop.xlane.xlu0 %1418 }
 0x3df   :  { %v1421_v20 = vmax.f32 %v1420_v44, %v1419_v28  ;;  %v5610_v44 = vmax.f32 %v4762_v26, 0.0  ;;  %v5616_v26 = vmax.f32 %v4883_v49, 0.0 }
 0x3e1   :  { %v1422_v2 = vsub.f32 %v731_v41, %v1421_v20  ;;  %v1425_v0 = vsub.f32 %v1075_v63, %v1421_v20  ;;  %v1428_v31 = vsub.f32 %v1419_v28, %v1421_v20  ;;  %v5609_v41 = vmax.f32 %v4828_v11, 0.0 }
 0x3e2   :  { %v5611_v20 = vmax.f32 %v4866_v62, 0.0  ;;  %v5615_v11 = vmax.f32 %v4770_v35, 0.0  ;;  %v5617_v62 = vmax.f32 %v4869_v17, 0.0  ;;  %v5621_v17 = vmax.f32 %v4787_v47, 0.0 }
 0x3e3   :  { %v1423_v52 = vmul.f32 1.442695, %v1422_v2  ;;  %v1426_v6 = vmul.f32 1.442695, %v1425_v0  ;;  %v1429_v22 = vmul.f32 1.442695, %v1428_v31 }
 0x3e4   :  { %v5612_v0 = vmax.f32 %v4774_v37, 0.0 }
 0x3e5   :  { %4003 = vpow2.f32 %v1423_v52  ;;  %v5613_v52 = vmax.f32 %v4873_v39, 0.0  ;;  %v5618_v39 = vmax.f32 %v4790_v48, 0.0 }
 0x3e6   :  { %4005 = vpow2.f32 %v1426_v6 }
 0x3e7   :  { %4007 = vpow2.f32 %v1429_v22 }
 0x3ef   :  { %v4004_v42 = vpop.eup %4003 }
 0x3f0   :  { %v4006_v50 = vpop.eup %4005 }
 0x3f1   :  { %v1431_v32 = vadd.f32 %v4006_v50, %v4004_v42  ;;  %v4008_v54 = vpop.eup %4007 }
 0x3f3   :  { %v1432_v55 = vadd.f32 %v4008_v54, %v1431_v32 }
 0x3f5   :  { %4009 = vrcp.f32 %v1432_v55 }
 0x3ff   :  { %v4010_v30 = vpop.eup %4009 }
 0x400   :  { %v1435_v56 = vmul.f32 %v4010_v30, %v4004_v42  ;;  %v1448_v36 = vmul.f32 %v4010_v30, %v4006_v50  ;;  %v1469_v5 = vmul.f32 %v4010_v30, %v4008_v54  ;;  %v5614_v42 = vmax.f32 %v4877_v21, 0.0 }
 0x402   :  { %v1439_v53 = vrot.slane %v1435_v56, %v4743_v15  ;;  %v1452_v19 = vrot.slane %v1448_v36, %v4743_v15  ;;  %v5022_v40 = vrot.slane %v1469_v5, %v4743_v15  ;;  %v1759_v56 = vld [vmem:[#allocation7 + $0x10] sm:$0xff]  ;;  %v1760_v36 = vld [vmem:[#allocation7 + $0x18] sm:$0xff]  ;;  %v5619_v5 = vmax.f32 %v4902_v45, 0.0 }
 0x403   :  { %v5623_v45 = vmov 0.0  }
 0x404   :  { %v1440_v29 = vmul.f32 %v1439_v53, %v5608_v33  ;;  %v1453_v63 = vmul.f32 %v1452_v19, %v5609_v41  ;;  %v1441_v28 = vmul.f32 %v1439_v53, %v5610_v44  ;;  %v1454_v2 = vmul.f32 %v1452_v19, %v5611_v20 }
 0x405   :  { %v1442_v31 = vmul.f32 %v1439_v53, %v5612_v0  ;;  %v1455_v6 = vmul.f32 %v1452_v19, %v5613_v52  ;;  %v1474_v27 = vmul.f32 %v5022_v40, %v5614_v42  ;;  %v1443_v50 = vmul.f32 %v1439_v53, %v5615_v11 }
 0x406   :  { %v1461_v22 = vadd.f32 %v1453_v63, %v1440_v29  ;;  %v1456_v32 = vmul.f32 %v1452_v19, %v5616_v26  ;;  %v1462_v54 = vadd.f32 %v1454_v2, %v1441_v28  ;;  %v1475_v37 = vmul.f32 %v5022_v40, %v5617_v62 }
 0x407   :  { %v1463_v55 = vadd.f32 %v1455_v6, %v1442_v31  ;;  %v1444_v30 = vmul.f32 %v1439_v53, %v5618_v39  ;;  %v1476_v35 = vmul.f32 %v5022_v40, %v5619_v5  ;;  %v5620_v33 = vmax.f32 %v4898_v4, 0.0  ;;  %v1761_v6 = vld [vmem:[#allocation7 + $0x20] sm:$0xff] }
 0x408   :  { %v1482_v21 = vadd.f32 %v1474_v27, %v1461_v22  ;;  %v1483_v29 = vadd.f32 %v1475_v37, %v1462_v54  ;;  %v1464_v41 = vadd.f32 %v1456_v32, %v1443_v50  ;;  %v1445_v63 = vmul.f32 %v1439_v53, %v5621_v17  ;;  %v1762_v22 = vld [vmem:[#allocation7 + $0x28] sm:$0xff]  ;;  %v1764_v37 = vld [vmem:[#allocation7 + $0x38] sm:$0xff]  ;;  %v4067_v17 = vld [vmem:[%s5533_s0] sm:$0xff] }
 0x409   :  { %v1457_v49 = vmul.f32 %v1452_v19, %v5620_v33  ;;  %v5622_v44 = vmax.f32 %v4917_v58, 0.0  ;;  %v1484_v48 = vadd.f32 %v1476_v35, %v1463_v55  ;;  %v5057_v2 = vpack.c.bf16 %v1760_v36, %v1759_v56  ;;  %v1767_v33 = vld [vmem:[#allocation7 + $0x50] sm:$0xff] }
 0x40a   :  { %1603 = vmatmul.mubr.f32.vlgmr.msra.gmra.mrb[32].mxu0 %v1482_v21  ;;  %3299 = vmatprep.mubr.f32.mxu1 %v1482_v21  ;;  %v5624_v4 = vmax.f32 %v4894_v51, 0.0  ;;  %v5625_v31 = vmax.f32 %v4809_v61, 0.0  ;;  %v5626_v52 = vmax.f32 %v4928_v43, 0.0  ;;  %v5627_v42 = vmax.f32 %v4931_v59, 0.0  ;;  %v1766_v21 = vld [vmem:[#allocation7 + $0x48] sm:$0xff] }
 0x40b   :  { %v1458_v28 = vmul.f32 %v1452_v19, %v5622_v44  ;;  %v1465_v20 = vadd.f32 %v1457_v49, %v1444_v30  ;;  %3300 = vmatmul.mubr.f32.vlgmr.msra.gmra.mrb[40].mxu1 %v1483_v29  ;;  %1608 = vmatprep.mubr.f32.mxu0 %v5623_v45  ;;  %v5628_v26 = vmax.f32 %v4806_v60, 0.0  ;;  %v5629_v32 = vmax.f32 %v4948_v24, 0.0  ;;  %v1768_v49 = vld [vmem:[#allocation7 + $0x58] sm:$0xff] }
 0x40c   :  { %v1477_v0 = vmul.f32 %v5022_v40, %v5624_v4  ;;  %v1446_v47 = vmul.f32 %v1439_v53, %v5625_v31  ;;  %v1459_v58 = vmul.f32 %v1452_v19, %v5626_v52  ;;  %3302 = vmatprep.mubr.f32.mxu1 %v1484_v48  ;;  %v1478_v27 = vmul.f32 %v5022_v40, %v5627_v42  ;;  %v1772_v44 = vld [vmem:[#allocation7 + $0x78] sm:$0xff] }
 0x40d   :  { %v1466_v50 = vadd.f32 %v1458_v28, %v1445_v63  ;;  %v1447_v51 = vmul.f32 %v1439_v53, %v5628_v26  ;;  %v1460_v54 = vmul.f32 %v1452_v19, %v5629_v32  ;;  %3818 = vmatpush3.bf16.msra.mxu1 %v5016_v38  ;;  %v5076_v62 = vpack.c.bf16 %v1762_v22, %v1761_v6  ;;  %v1763_v53 = vld [vmem:[#allocation7 + $0x30] sm:$0xff] }
 0x40e   :  { %v1485_v11 = vadd.f32 %v1477_v0, %v1464_v41  ;;  %1609 = vmatmul.mubr.f32.gmra.mrb[34].mxu0 %v1483_v29  ;;  %v1486_v43 = vadd.f32 %v1478_v27, %v1465_v20  ;;  %v1467_v61 = vadd.f32 %v1459_v58, %v1446_v47  ;;  %3820 = vmatprep.subr.bf16.mxu1 %v5057_v2  ;;  %v5630_v59 = vmax.f32 %v4922_v46, 0.0  ;;  %v1770_v29 = vld [vmem:[#allocation7 + $0x68] sm:$0xff]  ;;  %v1771_v63 = vld [vmem:[#allocation7 + $0x70] sm:$0xff] }
 0x40f   :  { %1614 = vmatprep.mubr.f32.mxu0 %v5623_v45  ;;  %v5631_v24 = vmax.f32 %v4956_v1, 0.0  ;;  %v1468_v39 = vadd.f32 %v1460_v54, %v1447_v51  ;;  %v5087_v56 = vpack.c.bf16 %v1764_v37, %v1763_v53  ;;  %v5632_v46 = vmax.f32 %v4952_v3, 0.0  ;;  %v1765_v1 = vld [vmem:[#allocation7 + $0x40] sm:$0xff] }
 0x410   :  { %3303 = vmatmul.mubr.f32.gmra.mrb[42].mxu1 %v1485_v11  ;;  %v1479_v60 = vmul.f32 %v5022_v40, %v5630_v59  ;;  %v5095_v35 = vpack.c.bf16 %v1766_v21, %v1765_v1  ;;  %v5100_v3 = vpack.c.bf16 %v1768_v49, %v1767_v33  ;;  %v5116_v28 = vpack.c.bf16 %v1772_v44, %v1771_v63  ;;  %v4068_v49 = vld [vmem:[%s5533_s0 + $0x8] sm:$0xff]  ;;  %v4073_v44 = vld [vmem:[%s5533_s0 + $0x30] sm:$0xff] }
 0x411   :  { %3305 = vmatprep.mubr.f32.mxu1 %v1486_v43  ;;  %v1480_v19 = vmul.f32 %v5022_v40, %v5631_v24  ;;  %3822 = vmatpush3.bf16.msra.mxu1 %v5057_v2  ;;  %v1481_v36 = vmul.f32 %v5022_v40, %v5632_v46  ;;  %v1769_v40 = vld [vmem:[#allocation7 + $0x60] sm:$0xff]  ;;  %v4072_v63 = vld [vmem:[%s5533_s0 + $0x28] sm:$0xff] }
 0x412   :  { %v1487_v55 = vadd.f32 %v1479_v60, %v1466_v50  ;;  %1615 = vmatmul.mubr.f32.gmra.mrb[36].mxu0 %v1484_v48  ;;  %3824 = vmatprep.subr.bf16.mxu1 %v5076_v62  ;;  %v5105_v41 = vpack.c.bf16 %v1770_v29, %v1769_v40  ;;  %v4069_v40 = vld [vmem:[%s5533_s0 + $0x10] sm:$0xff]  ;;  %v4070_v29 = vld [vmem:[%s5533_s0 + $0x18] sm:$0xff] }
 0x413   :  { %v1488_v30 = vadd.f32 %v1480_v19, %v1467_v61  ;;  %1620 = vmatprep.mubr.f32.mxu0 %v5623_v45  ;;  %v1489_v5 = vadd.f32 %v1481_v36, %v1468_v39 }
 0x414   :  { %3306 = vmatmul.mubr.f32.gmra.mrb[44].mxu1 %v1487_v55 }
 0x415   :  { %3308 = vmatprep.mubr.f32.mxu1 %v1488_v30  ;;  %3826 = vmatpush3.bf16.msra.mxu1 %v5076_v62 }
 0x416   :  { %1621 = vmatmul.mubr.f32.gmra.mrb[38].mxu0 %v1485_v11  ;;  %3828 = vmatprep.subr.bf16.mxu1 %v5087_v56 }
 0x417   :  { %1626 = vmatprep.mubr.f32.mxu0 %v5623_v45 }
 0x418   :  { %3309 = vmatmul.mubr.f32.gmra.mrb[46].mxu1 %v1489_v5 }
 0x419   :  { %3830 = vmatpush3.bf16.msra.mxu1 %v5087_v56 }
 0x41a   :  { %1627 = vmatmul.mubr.f32.gmra.mrb[40].mxu0 %v1486_v43  ;;  %3832 = vmatprep.subr.bf16.mxu1 %v5095_v35 }
 0x41b   :  { %1632 = vmatprep.mubr.f32.mxu0 %v5623_v45 }
 0x41d   :  { %3834 = vmatpush3.bf16.msra.mxu1 %v5095_v35 }
 0x41e   :  { %1633 = vmatmul.mubr.f32.gmra.mrb[42].mxu0 %v1487_v55  ;;  %3836 = vmatprep.subr.bf16.mxu1 %v5100_v3 }
 0x41f   :  { %1638 = vmatprep.mubr.f32.mxu0 %v5623_v45 }
 0x421   :  { %3838 = vmatpush3.bf16.msra.mxu1 %v5100_v3 }
 0x422   :  { %1639 = vmatmul.mubr.f32.gmra.mrb[44].mxu0 %v1488_v30  ;;  %3840 = vmatprep.subr.bf16.mxu1 %v5105_v41 }
 0x423   :  { %1644 = vmatprep.mubr.f32.mxu0 %v5623_v45 }
 0x425   :  { %3842 = vmatpush3.bf16.msra.mxu1 %v5105_v41 }
 0x426   :  { %1645 = vmatmul.mubr.f32.gmra.mrb[46].mxu0 %v1489_v5  ;;  %3844 = vmatprep.subr.bf16.mxu1 %v5116_v28 }
 0x427   :  { %3327 = vmatprep.mubr.msk.f32.mxu0 %vm387_vm0, %v4067_v17  ;;  %v4071_v17 = vld [vmem:[%s5533_s0 + $0x20] sm:$0xff] }
 0x429   :  { %3846 = vmatpush3.bf16.msra.mxu1 %v5116_v28 }
 0x4dd   :  { %v1604_v48 = vpop.f32.mrb[32].mxu0 }
 0x4de   :  { %v1606_v20 = vpop.f32.mrb[33].mxu0  ;;  %v3301_v45 = vpop.f32.mrb[40].mxu1 }
 0x4df   :  { %v1717_v4 = vpop.f32.mrb[41].mxu1 }
 0x4e0   :  { %v5120_v0 = vpack.c.bf16 %v3301_v45, %v1717_v4  ;;  %v4076_v45 = vld [vmem:[%s5533_s0 + $0x48] sm:$0xff]  ;;  %v4077_v4 = vld [vmem:[%s5533_s0 + $0x50] sm:$0xff] }
 0x4e1   :  { %v1610_v31 = vpop.f32.mrb[34].mxu0 }
 0x4e2   :  { %v3799_v47 = vpack.c.bf16 %v1610_v31, %v1604_v48  ;;  %v1612_v52 = vpop.f32.mrb[35].mxu0  ;;  %3896 = vmatprep.subr.bf16.mxu1 %v5120_v0  ;;  %v4074_v48 = vld [vmem:[%s5533_s0 + $0x38] sm:$0xff] }
 0x4e3   :  { %v3304_v58 = vpop.f32.mrb[42].mxu1  ;;  %v3847_v6 = vpack.c.bf16 %v1612_v52, %v1606_v20  ;;  %v4075_v20 = vld [vmem:[%s5533_s0 + $0x40] sm:$0xff]  ;;  %v4078_v31 = vld [vmem:[%s5533_s0 + $0x58] sm:$0xff]  ;;  %v4080_v52 = vld [vmem:[%s5533_s0 + $0x68] sm:$0xff] }
 0x4e4   :  { %v1727_v22 = vpop.f32.mrb[43].mxu1  ;;  %3800 = vmatprep.subr.bf16.mxu0 %v3799_v47 }
 0x4e5   :  { %v5123_v42 = vpack.c.bf16 %v3304_v58, %v1727_v22  ;;  %v1616_v27 = vpop.f32.mrb[36].mxu0  ;;  %3802 = vmatpush3.bf16.msra.mxu0 %v3799_v47  ;;  %v4079_v47 = vld [vmem:[%s5533_s0 + $0x60] sm:$0xff]  ;;  %v4081_v58 = vld [vmem:[%s5533_s0 + $0x70] sm:$0xff] }
 0x4e6   :  { %v1618_v11 = vpop.f32.mrb[37].mxu0  ;;  %v5208_v22 = vld [vmem:[%s5542_s9] sm:$0x7] }
 0x4e7   :  { %v3307_v50 = vpop.f32.mrb[44].mxu1 }
 0x4e8   :  { %v1737_v26 = vpop.f32.mrb[45].mxu1 }
 0x4e9   :  { %v5125_v51 = vpack.c.bf16 %v3307_v50, %v1737_v26  ;;  %v1622_v32 = vpop.f32.mrb[38].mxu0 }
 0x4ea   :  { %v3803_v54 = vpack.c.bf16 %v1622_v32, %v1616_v27  ;;  %v1624_v43 = vpop.f32.mrb[39].mxu0  ;;  %v1891_v27 = vrot.slane %v5208_v22, %v4743_v15 }
 0x4eb   :  { %v3310_v61 = vpop.f32.mrb[46].mxu1  ;;  %v3851_v59 = vpack.c.bf16 %v1624_v43, %v1618_v11 }
 0x4ec   :  { %v1747_v60 = vpop.f32.mrb[47].mxu1  ;;  %3804 = vmatprep.subr.bf16.mxu0 %v3803_v54 }
 0x4ed   :  { %v5127_v53 = vpack.c.bf16 %v3310_v61, %v1747_v60  ;;  %v1628_v37 = vpop.f32.mrb[40].mxu0  ;;  %3806 = vmatpush3.bf16.msra.mxu0 %v3803_v54 }
 0x4ee   :  { %v1630_v24 = vpop.f32.mrb[41].mxu0 }
 0x4f1   :  { %v1634_v19 = vpop.f32.mrb[42].mxu0 }
 0x4f2   :  { %v3807_v55 = vpack.c.bf16 %v1634_v19, %v1628_v37  ;;  %v1636_v39 = vpop.f32.mrb[43].mxu0 }
 0x4f3   :  { %v3855_v30 = vpack.c.bf16 %v1636_v39, %v1630_v24 }
 0x4f4   :  { %3808 = vmatprep.subr.bf16.mxu0 %v3807_v55 }
 0x4f5   :  { %v1640_v46 = vpop.f32.mrb[44].mxu0  ;;  %3810 = vmatpush3.bf16.msra.mxu0 %v3807_v55 }
 0x4f6   :  { %v1642_v36 = vpop.f32.mrb[45].mxu0 }
 0x4f9   :  { %v1646_v1 = vpop.f32.mrb[46].mxu0 }
 0x4fa   :  { %v3811_v21 = vpack.c.bf16 %v1646_v1, %v1640_v46  ;;  %v1648_v5 = vpop.f32.mrb[47].mxu0 }
 0x4fb   :  { %v3859_v33 = vpack.c.bf16 %v1648_v5, %v1642_v36 }
 0x4fc   :  { %3812 = vmatprep.subr.bf16.mxu0 %v3811_v21 }
 0x4fd   :  { %3814 = vmatpush3.bf16.msra.mxu0 %v3811_v21 }
 0x4fe   :  { %3848 = vmatprep.subr.bf16.mxu0 %v3847_v6 }
 0x500   :  { %3328 = vmatmul.mubr.msk.f32.vlgmr.msra.gmra.mrb[48].mxu0 %vm387_vm0, %v4068_v49 }
 0x501   :  { %3850 = vmatpush3.bf16.msra.mxu0 %v3847_v6  ;;  %3330 = vmatprep.mubr.msk.f32.mxu0 %vm387_vm0, %v4069_v40  ;;  %v4082_v6 = vld [vmem:[%s5533_s0 + $0x78] sm:$0xff]  ;;  %v5633_v40 = vsub.s32 1, %v4740_v14 }
 0x502   :  { %3852 = vmatprep.subr.bf16.mxu0 %v3851_v59 }
 0x504   :  { %3331 = vmatmul.mubr.msk.f32.gmra.mrb[50].mxu0 %vm387_vm0, %v4070_v29 }
 0x505   :  { %3854 = vmatpush3.bf16.msra.mxu0 %v3851_v59  ;;  %3333 = vmatprep.mubr.msk.f32.mxu0 %vm387_vm0, %v4071_v17 }
 0x506   :  { %3856 = vmatprep.subr.bf16.mxu0 %v3855_v30 }
 0x508   :  { %3334 = vmatmul.mubr.msk.f32.gmra.mrb[52].mxu0 %vm387_vm0, %v4072_v63 }
 0x509   :  { %3858 = vmatpush3.bf16.msra.mxu0 %v3855_v30  ;;  %3336 = vmatprep.mubr.msk.f32.mxu0 %vm387_vm0, %v4073_v44 }
 0x50a   :  { %3860 = vmatprep.subr.bf16.mxu0 %v3859_v33 }
 0x50c   :  { %3337 = vmatmul.mubr.msk.f32.gmra.mrb[54].mxu0 %vm387_vm0, %v4074_v48 }
 0x50d   :  { %3862 = vmatpush3.bf16.msra.mxu0 %v3859_v33  ;;  %3399 = vmatprep.mubr.msk.f32.mxu0 %vm387_vm0, %v4075_v20 }
 0x50e   :  { %3864 = vmatprep.subr.bf16.mxu0 %v5016_v38 }
 0x510   :  { %3400 = vmatmul.mubr.msk.f32.vlgmr.msra.gmra.mrb[56].mxu0 %vm387_vm0, %v4076_v45 }
 0x511   :  { %3402 = vmatprep.mubr.msk.f32.mxu0 %vm387_vm0, %v4077_v4  ;;  %3866 = vmatpush3.bf16.msra.mxu0 %v5016_v38 }
 0x512   :  { %3868 = vmatprep.subr.bf16.mxu0 %v5057_v2 }
 0x514   :  { %3403 = vmatmul.mubr.msk.f32.gmra.mrb[58].mxu0 %vm387_vm0, %v4078_v31 }
 0x515   :  { %3405 = vmatprep.mubr.msk.f32.mxu0 %vm387_vm0, %v4079_v47  ;;  %3870 = vmatpush3.bf16.msra.mxu0 %v5057_v2  ;;  %v4083_v47 = vld [vmem:[%s5533_s0 + $0x80] sm:$0xff] }
 0x516   :  { %3872 = vmatprep.subr.bf16.mxu0 %v5076_v62 }
 0x518   :  { %3406 = vmatmul.mubr.msk.f32.gmra.mrb[60].mxu0 %vm387_vm0, %v4080_v52 }
 0x519   :  { %3408 = vmatprep.mubr.msk.f32.mxu0 %vm387_vm0, %v4081_v58  ;;  %3874 = vmatpush3.bf16.msra.mxu0 %v5076_v62 }
 0x51a   :  { %3876 = vmatprep.subr.bf16.mxu0 %v5087_v56 }
 0x51c   :  { %3409 = vmatmul.mubr.msk.f32.gmra.mrb[62].mxu0 %vm387_vm0, %v4082_v6 }
 0x51d   :  { %3878 = vmatpush3.bf16.msra.mxu0 %v5087_v56 }
 0x51e   :  { %3880 = vmatprep.subr.bf16.mxu0 %v5095_v35 }
 0x521   :  { %3882 = vmatpush3.bf16.msra.mxu0 %v5095_v35 }
 0x522   :  { %3884 = vmatprep.subr.bf16.mxu0 %v5100_v3 }
 0x525   :  { %3886 = vmatpush3.bf16.msra.mxu0 %v5100_v3 }
 0x526   :  { %3888 = vmatprep.subr.bf16.mxu0 %v5105_v41 }
 0x529   :  { %3890 = vmatpush3.bf16.msra.mxu0 %v5105_v41 }
 0x52a   :  { %3892 = vmatprep.subr.bf16.mxu0 %v5116_v28 }
 0x52d   :  { %3894 = vmatpush3.bf16.msra.mxu0 %v5116_v28 }
 0x5d3   :  { %v3329_v11 = vpop.f32.mrb[48].mxu0 }
 0x5d4   :  { %v1881_v50 = vmul.f32 %v3329_v11, %v4734_v10  ;;  %v1841_v26 = vpop.f32.mrb[49].mxu0  ;;  %v4084_v11 = vld [vmem:[%s5533_s0 + $0x88] sm:$0xff] }
 0x5d5   :  { %v1880_v32 = vmul.f32 %v1841_v26, %v4730_v8  ;;  %v5635_v26 = vld [vmem:[#allocation17_spill] sm:$0xff] }
 0x5d6   :  { %v5214_v54 = vadd.f32 %v1891_v27, %v1881_v50 }
 0x5d7   :  { %v5216_v43 = vadd.f32 %v1891_v27, %v1880_v32  ;;  %v3332_v61 = vpop.f32.mrb[50].mxu0 }
 0x5d8   :  { %v1883_v59 = vmul.f32 %v3332_v61, %v4732_v9  ;;  %v1851_v60 = vpop.f32.mrb[51].mxu0  ;;  %v1901_v19 = vmax.f32 %v5214_v54, 0.0  ;;  %v4085_v61 = vld [vmem:[%s5533_s0 + $0x90] sm:$0xff] }
 0x5d9   :  { %v1900_v37 = vmax.f32 %v5216_v43, 0.0  ;;  %v1882_v24 = vmul.f32 %v1851_v60, %v4728_v7 }
 0x5da   :  { %v5222_v55 = vadd.f32 %v1891_v27, %v1883_v59 }
 0x5db   :  { %v5224_v10 = vadd.f32 %v1891_v27, %v1882_v24  ;;  %v3335_v39 = vpop.f32.mrb[52].mxu0  ;;  %3371 = vmatprep.mubr.f32.mxu1 %v1900_v37 }
 0x5dc   :  { %v1885_v8 = vmul.f32 %v3335_v39, %v4736_v12  ;;  %v1861_v30 = vpop.f32.mrb[53].mxu0  ;;  %3372 = vmatmul.mubr.f32.vlgmr.msra.gmra.mrb[48].mxu1 %v1901_v19  ;;  %v1903_v46 = vmax.f32 %v5222_v55, 0.0 }
 0x5dd   :  { %v1902_v9 = vmax.f32 %v5224_v10, 0.0  ;;  %v1884_v7 = vmul.f32 %v1861_v30, %v4738_v13  ;;  %3898 = vmatpush3.bf16.msra.mxu1 %v5120_v0 }
 0x5de   :  { %v5235_v36 = vadd.f32 %v1891_v27, %v1885_v8  ;;  %3900 = vmatprep.subr.bf16.mxu1 %v5123_v42  ;;  %v5636_v8 = vld [vmem:[#allocation20_spill] sm:$0xff] }
 0x5df   :  { %v5238_v1 = vadd.f32 %v1891_v27, %v1884_v7  ;;  %v3338_v21 = vpop.f32.mrb[54].mxu0  ;;  %3374 = vmatprep.mubr.f32.mxu1 %v1902_v9 }
 0x5e0   :  { %v1887_v12 = vmul.f32 %v3338_v21, %v4745_v16  ;;  %v1871_v5 = vpop.f32.mrb[55].mxu0  ;;  %3375 = vmatmul.mubr.f32.gmra.mrb[50].mxu1 %v1903_v46  ;;  %v1905_v33 = vmax.f32 %v5235_v36, 0.0  ;;  %v2161_v16 = vrot.slane %v5208_v22, %v5633_v40 }
 0x5e1   :  { %v1904_v13 = vmax.f32 %v5238_v1, 0.0  ;;  %v1886_v0 = vmul.f32 %v1871_v5, %v4752_v18  ;;  %3902 = vmatpush3.bf16.msra.mxu1 %v5123_v42 }
 0x5e2   :  { %v5249_v49 = vadd.f32 %v1891_v27, %v1887_v12  ;;  %3904 = vmatprep.subr.bf16.mxu1 %v5125_v51  ;;  %v5637_v12 = vld [vmem:[#allocation21_spill] sm:$0xff] }
 0x5e3   :  { %v5255_v29 = vadd.f32 %v1891_v27, %v1886_v0  ;;  %3377 = vmatprep.mubr.f32.mxu1 %v1904_v13  ;;  %v3401_v17 = vpop.f32.mrb[56].mxu0  ;;  %v4087_v0 = vld [vmem:[%s5533_s0 + $0xa0] sm:$0xff] }
 0x5e4   :  { %v2151_v18 = vmul.f32 %v3401_v17, %v4757_v23  ;;  %3378 = vmatmul.mubr.f32.gmra.mrb[52].mxu1 %v1905_v33  ;;  %v2111_v42 = vpop.f32.mrb[57].mxu0  ;;  %v1907_v48 = vmax.f32 %v5249_v49, 0.0 }
 0x5e5   :  { %v1906_v63 = vmax.f32 %v5255_v29, 0.0  ;;  %v2150_v44 = vmul.f32 %v2111_v42, %v4760_v25  ;;  %3906 = vmatpush3.bf16.msra.mxu1 %v5125_v51  ;;  %v4088_v42 = vld [vmem:[%s5533_s0 + $0xa8] sm:$0xff] }
 0x5e6   :  { %v5266_v20 = vadd.f32 %v2161_v16, %v2151_v18  ;;  %3908 = vmatprep.subr.bf16.mxu1 %v5127_v53 }
 0x5e7   :  { %v5269_v45 = vadd.f32 %v2161_v16, %v2150_v44  ;;  %3380 = vmatprep.mubr.f32.mxu1 %v1906_v63  ;;  %v3404_v23 = vpop.f32.mrb[58].mxu0  ;;  %v4089_v44 = vld [vmem:[%s5533_s0 + $0xb0] sm:$0xff] }
 0x5e8   :  { %v2153_v4 = vmul.f32 %v3404_v23, %v4798_v34  ;;  %3381 = vmatmul.mubr.f32.gmra.mrb[54].mxu1 %v1907_v48  ;;  %v2121_v25 = vpop.f32.mrb[59].mxu0  ;;  %v2171_v52 = vmax.f32 %v5266_v20, 0.0  ;;  %v4090_v23 = vld [vmem:[%s5533_s0 + $0xb8] sm:$0xff] }
 0x5e9   :  { %v2170_v51 = vmax.f32 %v5269_v45, 0.0  ;;  %v2152_v31 = vmul.f32 %v2121_v25, %v4803_v57  ;;  %3910 = vmatpush3.bf16.msra.mxu1 %v5127_v53  ;;  %3471 = vmatprep.mubr.msk.f32.mxu1 %vm387_vm0, %v4083_v47  ;;  %v5634_v57 = vld [vmem:[#allocation16_spill] sm:$0xff] }
 0x5ea   :  { %v5284_v58 = vadd.f32 %v2161_v16, %v2153_v4  ;;  %3912 = vmatprep.subr.bf16.mxu1 %v5016_v38 }
 0x5eb   :  { %v5287_v34 = vadd.f32 %v2161_v16, %v2152_v31  ;;  %v3407_v6 = vpop.f32.mrb[60].mxu0  ;;  %3443 = vmatprep.mubr.f32.mxu0 %v2170_v51 }
 0x5ec   :  { %v2155_v53 = vmul.f32 %v3407_v6, %v5634_v57  ;;  %v2131_v27 = vpop.f32.mrb[61].mxu0  ;;  %3444 = vmatmul.mubr.f32.vlgmr.msra.gmra.mrb[64].mxu0 %v2171_v52  ;;  %3472 = vmatmul.mubr.msk.f32.vlgmr.msra.gmra.mrb[56].mxu1 %vm387_vm0, %v4084_v11  ;;  %v2173_v59 = vmax.f32 %v5284_v58, 0.0 }
 0x5ed   :  { %v2172_v50 = vmax.f32 %v5287_v34, 0.0  ;;  %v2154_v32 = vmul.f32 %v2131_v27, %v5635_v26  ;;  %3474 = vmatprep.mubr.msk.f32.mxu1 %vm387_vm0, %v4085_v61  ;;  %3914 = vmatpush3.bf16.msra.mxu1 %v5016_v38  ;;  %v4086_v38 = vld [vmem:[%s5533_s0 + $0x98] sm:$0xff] }
 0x5ee   :  { %v5306_v60 = vadd.f32 %v2161_v16, %v2155_v53  ;;  %3916 = vmatprep.subr.bf16.mxu1 %v5057_v2 }
 0x5ef   :  { %v5309_v24 = vadd.f32 %v2161_v16, %v2154_v32  ;;  %v3410_v39 = vpop.f32.mrb[62].mxu0  ;;  %3446 = vmatprep.mubr.f32.mxu0 %v2172_v50 }
 0x5f0   :  { %v2157_v30 = vmul.f32 %v3410_v39, %v5636_v8  ;;  %v2141_v7 = vpop.f32.mrb[63].mxu0  ;;  %3447 = vmatmul.mubr.f32.gmra.mrb[66].mxu0 %v2173_v59  ;;  %3475 = vmatmul.mubr.msk.f32.gmra.mrb[58].mxu1 %vm387_vm0, %v4086_v38  ;;  %v2175_v40 = vmax.f32 %v5306_v60, 0.0 }
 0x5f1   :  { %v2174_v21 = vmax.f32 %v5309_v24, 0.0  ;;  %v2156_v5 = vmul.f32 %v2141_v7, %v5637_v12  ;;  %3477 = vmatprep.mubr.msk.f32.mxu1 %vm387_vm0, %v4087_v0  ;;  %3918 = vmatpush3.bf16.msra.mxu1 %v5057_v2  ;;  %v5639_v0 = vld [vmem:[#allocation12_spill] sm:$0xff] }
 0x5f2   :  { %v5328_v17 = vadd.f32 %v2161_v16, %v2157_v30  ;;  %3920 = vmatprep.subr.bf16.mxu1 %v5076_v62  ;;  %v5638_v30 = vsub.s32 2, %v4740_v14 }
 0x5f3   :  { %v5331_v18 = vadd.f32 %v2161_v16, %v2156_v5  ;;  %3449 = vmatprep.mubr.f32.mxu0 %v2174_v21 }
 0x5f4   :  { %3450 = vmatmul.mubr.f32.gmra.mrb[68].mxu0 %v2175_v40  ;;  %3478 = vmatmul.mubr.msk.f32.gmra.mrb[60].mxu1 %vm387_vm0, %v4088_v42  ;;  %v5595_v16 = vmax.f32 %v5328_v17, 0.0  ;;  %v5382_v7 = vrot.slane %v5208_v22, %v5638_v30  ;;  %v5647_v36 = vmax.f32 %v5328_v17, 0.0 }
 0x5f5   :  { %v2176_v2 = vmax.f32 %v5331_v18, 0.0  ;;  %3480 = vmatprep.mubr.msk.f32.mxu1 %vm387_vm0, %v4089_v44  ;;  %3922 = vmatpush3.bf16.msra.mxu1 %v5076_v62  ;;  %v5369_v62 = vld [vmem:[%s5544_s11] ss:$0 sm:$0xff] }
 0x5f6   :  { %3924 = vmatprep.subr.bf16.mxu1 %v5087_v56 }
 0x5f7   :  { %3452 = vmatprep.mubr.f32.mxu0 %v2176_v2 }
 0x5f8   :  { %3453 = vmatmul.mubr.f32.gmra.mrb[70].mxu0 %v5595_v16  ;;  %3481 = vmatmul.mubr.msk.f32.gmra.mrb[62].mxu1 %vm387_vm0, %v4090_v23 }
 0x5f9   :  { %3926 = vmatpush3.bf16.msra.mxu1 %v5087_v56 }
 0x5fa   :  { %3928 = vmatprep.subr.bf16.mxu1 %v5095_v35 }
 0x5fd   :  { %3930 = vmatpush3.bf16.msra.mxu1 %v5095_v35 }
 0x5fe   :  { %3932 = vmatprep.subr.bf16.mxu1 %v5100_v3 }
 0x601   :  { %3934 = vmatpush3.bf16.msra.mxu1 %v5100_v3 }
 0x602   :  { %3936 = vmatprep.subr.bf16.mxu1 %v5105_v41 }
 0x605   :  { %3938 = vmatpush3.bf16.msra.mxu1 %v5105_v41 }
 0x606   :  { %3940 = vmatprep.subr.bf16.mxu1 %v5116_v28 }
 0x609   :  { %3942 = vmatpush3.bf16.msra.mxu1 %v5116_v28 }
 0x6af   :  { %v3373_v56 = vpop.f32.mrb[48].mxu1 }
 0x6b0   :  { %v1986_v35 = vadd.f32 %v3373_v56, %v5369_v62  ;;  %v1980_v4 = vpop.f32.mrb[49].mxu1 }
 0x6b1   :  { %v1981_v25 = vadd.f32 %v5369_v62, %v1980_v4  ;;  %v5640_v4 = vld [vmem:[#allocation13_spill] sm:$0xff] }
 0x6b2   :  { %4011 = vtanh.f32 %v1986_v35 }
 0x6b3   :  { %4013 = vtanh.f32 %v1981_v25  ;;  %v3376_v3 = vpop.f32.mrb[50].mxu1 }
 0x6b4   :  { %v1990_v31 = vpop.f32.mrb[51].mxu1  ;;  %v1996_v41 = vadd.f32 %v3376_v3, %v5369_v62 }
 0x6b5   :  { %v1991_v47 = vadd.f32 %v5369_v62, %v1990_v31 }
 0x6b7   :  { %4015 = vtanh.f32 %v1991_v47  ;;  %v3379_v28 = vpop.f32.mrb[52].mxu1 }
 0x6b8   :  { %v2000_v6 = vpop.f32.mrb[53].mxu1  ;;  %4017 = vtanh.f32 %v1996_v41  ;;  %v2006_v57 = vadd.f32 %v3379_v28, %v5369_v62 }
 0x6b9   :  { %v2001_v53 = vadd.f32 %v5369_v62, %v2000_v6  ;;  %v5641_v6 = vld [vmem:[#allocation14_spill] sm:$0xff] }
 0x6bb   :  { %4019 = vtanh.f32 %v2001_v53  ;;  %v3382_v27 = vpop.f32.mrb[54].mxu1 }
 0x6bc   :  { %v4012_v11 = vpop.eup %4011  ;;  %v2010_v26 = vpop.f32.mrb[55].mxu1  ;;  %4021 = vtanh.f32 %v2006_v57  ;;  %v2016_v61 = vadd.f32 %v3382_v27, %v5369_v62 }
 0x6bd   :  { %v4014_v32 = vpop.eup %4013  ;;  %v2011_v39 = vadd.f32 %v5369_v62, %v2010_v26 }
 0x6be   :  { %v2027_v8 = vadd.f32 %v4014_v32, %v4012_v11 }
 0x6bf   :  { %4023 = vtanh.f32 %v2011_v39  ;;  %v3445_v38 = vpop.f32.mrb[64].mxu0  ;;  %v3473_v12 = vpop.f32.mrb[56].mxu1  ;;  %v5642_v39 = vld [vmem:[#allocation15_spill] sm:$0xff] }
 0x6c0   :  { %v2250_v5 = vadd.f32 %v3445_v38, %v5369_v62  ;;  %v2415_v42 = vmul.f32 %v3473_v12, %v5639_v0  ;;  %v2244_v44 = vpop.f32.mrb[65].mxu0  ;;  %v2375_v23 = vpop.f32.mrb[57].mxu1  ;;  %4025 = vtanh.f32 %v2016_v61 }
 0x6c1   :  { %v4016_v56 = vpop.eup %4015  ;;  %v2245_v35 = vadd.f32 %v5369_v62, %v2244_v44  ;;  %v2414_v25 = vmul.f32 %v2375_v23, %v5640_v4 }
 0x6c2   :  { %v2028_v3 = vadd.f32 %v4016_v56, %v2027_v8  ;;  %4027 = vtanh.f32 %v2250_v5  ;;  %v5389_v14 = vadd.f32 %v5382_v7, %v2415_v42  ;;  %v4018_v22 = vpop.eup %4017 }
 0x6c3   :  { %4029 = vtanh.f32 %v2245_v35  ;;  %v5392_v31 = vadd.f32 %v5382_v7, %v2414_v25  ;;  %v3448_v41 = vpop.f32.mrb[66].mxu0  ;;  %v3476_v47 = vpop.f32.mrb[58].mxu1  ;;  %v5643_v35 = vld [vmem:[#allocation18_spill] sm:$0xff] }
 0x6c4   :  { %v2029_v28 = vadd.f32 %v4018_v22, %v2028_v3  ;;  %v2417_v57 = vmul.f32 %v3476_v47, %v5641_v6  ;;  %v2254_v53 = vpop.f32.mrb[67].mxu0  ;;  %v2385_v27 = vpop.f32.mrb[59].mxu1  ;;  %v2260_v32 = vadd.f32 %v3448_v41, %v5369_v62  ;;  %v5593_v38 = vmax.f32 %v5389_v14, 0.0 }
 0x6c5   :  { %v4020_v11 = vpop.eup %4019  ;;  %v5594_v26 = vmax.f32 %v5392_v31, 0.0  ;;  %v2255_v61 = vadd.f32 %v5369_v62, %v2254_v53  ;;  %v2416_v8 = vmul.f32 %v2385_v27, %v5642_v39  ;;  %v5649_v58 = vmax.f32 %v5389_v14, 0.0 }
 0x6c6   :  { %v2030_v30 = vadd.f32 %v4020_v11, %v2029_v28  ;;  %v5401_v12 = vadd.f32 %v5382_v7, %v2417_v57  ;;  %v4022_v5 = vpop.eup %4021  ;;  %v5644_v28 = vld [vmem:[#allocation19_spill] sm:$0xff] }
 0x6c7   :  { %4031 = vtanh.f32 %v2255_v61  ;;  %v5404_v0 = vadd.f32 %v5382_v7, %v2416_v8  ;;  %v3451_v42 = vpop.f32.mrb[68].mxu0  ;;  %v3479_v44 = vpop.f32.mrb[60].mxu1  ;;  %3515 = vmatprep.mubr.f32.mxu1 %v5594_v26 }
 0x6c8   :  { %v2031_v23 = vadd.f32 %v4022_v5, %v2030_v30  ;;  %v2270_v56 = vadd.f32 %v3451_v42, %v5369_v62  ;;  %v2419_v4 = vmul.f32 %v3479_v44, %v5643_v35  ;;  %v2264_v25 = vpop.f32.mrb[69].mxu0  ;;  %v2395_v3 = vpop.f32.mrb[61].mxu1  ;;  %3516 = vmatmul.mubr.f32.vlgmr.msra.gmra.mrb[64].mxu1 %v5593_v38  ;;  %4033 = vtanh.f32 %v2260_v32  ;;  %v5645_v30 = vld [vmem:[#allocation22_spill] sm:$0xff] }
 0x6c9   :  { %v4024_v22 = vpop.eup %4023  ;;  %v5592_v41 = vmax.f32 %v5404_v0, 0.0  ;;  %v2265_v47 = vadd.f32 %v5369_v62, %v2264_v25  ;;  %v2418_v6 = vmul.f32 %v2395_v3, %v5644_v28  ;;  %v5591_v53 = vmax.f32 %v5401_v12, 0.0 }
 0x6ca   :  { %v2032_v57 = vadd.f32 %v4024_v22, %v2031_v23  ;;  %v5417_v27 = vadd.f32 %v5382_v7, %v2419_v4  ;;  %v4026_v11 = vpop.eup %4025  ;;  %v5646_v22 = vld [vmem:[#allocation23_spill] sm:$0xff]  ;;  %v5651_v60 = vmax.f32 %v5401_v12, 0.0 }
 0x6cb   :  { %4035 = vtanh.f32 %v2265_v47  ;;  %v5420_v61 = vadd.f32 %v5382_v7, %v2418_v6  ;;  %v3454_v39 = vpop.f32.mrb[70].mxu0  ;;  %v3482_v8 = vpop.f32.mrb[62].mxu1  ;;  %3518 = vmatprep.mubr.f32.mxu1 %v5592_v41 }
 0x6cc   :  { %v4028_v32 = vpop.eup %4027  ;;  %4037 = vtanh.f32 %v2270_v56  ;;  %v2421_v5 = vmul.f32 %v3482_v8, %v5645_v30  ;;  %v2274_v42 = vpop.f32.mrb[71].mxu0  ;;  %3519 = vmatmul.mubr.f32.gmra.mrb[66].mxu1 %v5591_v53  ;;  %v2033_v23 = vadd.f32 %v4026_v11, %v2032_v57  ;;  %v2280_v25 = vadd.f32 %v3454_v39, %v5369_v62 }
 0x6cd   :  { %v2405_v44 = vpop.f32.mrb[63].mxu1  ;;  %v4030_v35 = vpop.eup %4029  ;;  %v5588_v4 = vmax.f32 %v5420_v61, 0.0  ;;  %v2275_v3 = vadd.f32 %v5369_v62, %v2274_v42  ;;  %v5587_v56 = vmax.f32 %v5417_v27, 0.0  ;;  %v5653_v17 = vmax.f32 %v5417_v27, 0.0 }
 0x6ce   :  { %v2420_v47 = vmul.f32 %v2405_v44, %v5646_v22  ;;  %v2291_v28 = vadd.f32 %v4030_v35, %v4028_v32  ;;  %v5433_v6 = vadd.f32 %v5382_v7, %v2421_v5  ;;  %v2034_v8 = vrot.slane %v2033_v23, 4 }
 0x6cf   :  { %4039 = vtanh.f32 %v2275_v3  ;;  %3521 = vmatprep.mubr.f32.mxu1 %v5588_v4 }
 0x6d0   :  { %v5436_v30 = vadd.f32 %v5382_v7, %v2420_v47  ;;  %3522 = vmatmul.mubr.f32.gmra.mrb[68].mxu1 %v5587_v56  ;;  %v2035_v57 = vadd.f32 %v2034_v8, %v2033_v23  ;;  %4041 = vtanh.f32 %v2280_v25  ;;  %v5590_v5 = vmax.f32 %v5433_v6, 0.0 }
 0x6d1   :  { %v4032_v11 = vpop.eup %4031  ;;  %v5655_v14 = vmax.f32 %v5433_v6, 0.0 }
 0x6d2   :  { %v5589_v39 = vmax.f32 %v5436_v30, 0.0  ;;  %v2292_v32 = vadd.f32 %v4032_v11, %v2291_v28  ;;  %v2036_v42 = vrot.slane %v2035_v57, 2  ;;  %v4034_v44 = vpop.eup %4033  ;;  %v5451_v28 = vld [vmem:[%s5545_s12] sm:$0x1]  ;;  %s4194_s12 = smov [#allocation8]  }
 0x6d3   :  { %s2656_s16 = sshll.u32 %s4194_s12, 4  ;;  %s2657_s16 = int_to_ptr.vmem [resolvable:$true] %s2656_s16 }
 0x6d4   :  { %3524 = vmatprep.mubr.f32.mxu1 %v5589_v39  ;;  %v2293_v7 = vadd.f32 %v4034_v44, %v2292_v32  ;;  %v2037_v35 = vadd.f32 %v2036_v42, %v2035_v57  ;;  %s4157_s1 = scalar_lea.vmem %s2657_s16, 1024  ;;  %p4162_p11 = scmp.lt.s32.totalorder %s2657_s16, %s2657_s16 }
 0x6d5   :  { %3525 = vmatmul.mubr.f32.gmra.mrb[70].mxu1 %v5590_v5  ;;  %v4036_v3 = vpop.eup %4035  ;;  %p4158_p10 = scmp.ne.s32.totalorder %s2657_s16, %s4157_s1  ;;  %p4163_p12 = scmp.lt.s32.totalorder %s4157_s1, %s4157_s1 }
 0x6d6   :  { %v4038_v22 = vpop.eup %4037  ;;  %v2294_v23 = vadd.f32 %v4036_v3, %v2293_v7  ;;  %v2038_v47 = vrot.slane %v2037_v35, 1 }
 0x6d7   :  { %p4164_p13 = por %p4163_p12, %p4162_p11 }
 0x6d8   :  { %v2295_v25 = vadd.f32 %v4038_v22, %v2294_v23  ;;  %v2039_v8 = vadd.f32 %v2038_v47, %v2037_v35 }
 0x6d9   :  { %v4040_v56 = vpop.eup %4039  ;;  %p4165_p0 = pnand %p4164_p13, %p4158_p10 }
 0x6da   :  { %v2296_v11 = vadd.f32 %v4040_v56, %v2295_v25  ;;  %v2040_v4 = vmul.f32 0.015625, %v2039_v8  ;;  %v4042_v39 = vpop.eup %4041 }
 0x6dc   :  { %v2041_v32 = vmul.f32 %v2040_v4, %v5451_v28  ;;  %v2297_v44 = vadd.f32 %v4042_v39, %v2296_v11 }
 0x6de   :  { %v2042_v57 = vsel %vm728_vm1, %v2041_v32, 0.0  ;;  %v2298_v42 = vrot.slane %v2297_v44, 4 }
 0x6df   :  { %2043 = vadd.xlane.f32.xlu0 %v2042_v57 }
 0x6e0   :  { %v2299_v7 = vadd.f32 %v2298_v42, %v2297_v44 }
 0x6e2   :  { %v2300_v3 = vrot.slane %v2299_v7, 2 }
 0x6e4   :  { %v2301_v22 = vadd.f32 %v2300_v3, %v2299_v7 }
 0x6e6   :  { %v2302_v35 = vrot.slane %v2301_v22, 1 }
 0x6e8   :  { %v2303_v23 = vadd.f32 %v2302_v35, %v2301_v22 }
 0x6ea   :  { %v2304_v47 = vmul.f32 0.015625, %v2303_v23 }
 0x6ec   :  { %v2305_v5 = vmul.f32 %v2304_v47, %v5451_v28 }
 0x6ee   :  { %v2306_v53 = vsel %vm728_vm1, %v2305_v5, 0.0 }
 0x6ef   :  { %2307 = vadd.xlane.f32.xlu1 %v2306_v53 }
 0x79b   :  { %v3517_v56 = vpop.f32.mrb[64].mxu1 }
 0x79c   :  { %v2514_v25 = vadd.f32 %v3517_v56, %v5369_v62  ;;  %v2508_v4 = vpop.f32.mrb[65].mxu1 }
 0x79d   :  { %v2509_v39 = vadd.f32 %v5369_v62, %v2508_v4 }
 0x79e   :  { %4043 = vtanh.f32 %v2514_v25 }
 0x79f   :  { %4045 = vtanh.f32 %v2509_v39  ;;  %v3520_v8 = vpop.f32.mrb[66].mxu1 }
 0x7a0   :  { %v2518_v11 = vpop.f32.mrb[67].mxu1  ;;  %v2524_v32 = vadd.f32 %v3520_v8, %v5369_v62 }
 0x7a1   :  { %v2519_v44 = vadd.f32 %v5369_v62, %v2518_v11 }
 0x7a3   :  { %4047 = vtanh.f32 %v2519_v44  ;;  %v3523_v57 = vpop.f32.mrb[68].mxu1 }
 0x7a4   :  { %v2528_v42 = vpop.f32.mrb[69].mxu1  ;;  %4049 = vtanh.f32 %v2524_v32  ;;  %v2534_v53 = vadd.f32 %v3523_v57, %v5369_v62 }
 0x7a5   :  { %v2529_v5 = vadd.f32 %v5369_v62, %v2528_v42 }
 0x7a7   :  { %4051 = vtanh.f32 %v2529_v5 }
 0x7a8   :  { %v3526_v7 = vpop.f32.mrb[70].mxu1  ;;  %v4044_v3 = vpop.eup %4043  ;;  %4053 = vtanh.f32 %v2534_v53 }
 0x7a9   :  { %v2538_v22 = vpop.f32.mrb[71].mxu1  ;;  %v4046_v35 = vpop.eup %4045  ;;  %v2544_v23 = vadd.f32 %v3526_v7, %v5369_v62 }
 0x7aa   :  { %v2539_v47 = vadd.f32 %v5369_v62, %v2538_v22  ;;  %v2555_v56 = vadd.f32 %v4046_v35, %v4044_v3 }
 0x7ac   :  { %4055 = vtanh.f32 %v2539_v47  ;;  %v2044_v47 = vpop.xlane.xlu0 %2043 }
 0x7ad   :  { %v4048_v25 = vpop.eup %4047  ;;  %4057 = vtanh.f32 %v2544_v23 }
 0x7ae   :  { %v2556_v4 = vadd.f32 %v4048_v25, %v2555_v56  ;;  %v4050_v39 = vpop.eup %4049  ;;  %v2308_v56 = vpop.xlane.xlu1 %2307 }
 0x7af   :  { %v2573_v25 = vmax.f32 %v2044_v47, %v2308_v56 }
 0x7b0   :  { %v2557_v8 = vadd.f32 %v4050_v39, %v2556_v4 }
 0x7b1   :  { %v4052_v11 = vpop.eup %4051 }
 0x7b2   :  { %v2558_v32 = vadd.f32 %v4052_v11, %v2557_v8  ;;  %v4054_v44 = vpop.eup %4053 }
 0x7b4   :  { %v2559_v57 = vadd.f32 %v4054_v44, %v2558_v32 }
 0x7b6   :  { %v4056_v42 = vpop.eup %4055 }
 0x7b7   :  { %v2560_v5 = vadd.f32 %v4056_v42, %v2559_v57  ;;  %v4058_v41 = vpop.eup %4057 }
 0x7b9   :  { %v2561_v38 = vadd.f32 %v4058_v41, %v2560_v5 }
 0x7bb   :  { %v2562_v53 = vrot.slane %v2561_v38, 4 }
 0x7bd   :  { %v2563_v26 = vadd.f32 %v2562_v53, %v2561_v38 }
 0x7bf   :  { %v2564_v7 = vrot.slane %v2563_v26, 2 }
 0x7c1   :  { %v2565_v16 = vadd.f32 %v2564_v7, %v2563_v26 }
 0x7c3   :  { %v2566_v62 = vrot.slane %v2565_v16, 1 }
 0x7c5   :  { %v2567_v3 = vadd.f32 %v2566_v62, %v2565_v16 }
 0x7c7   :  { %v2568_v22 = vmul.f32 0.015625, %v2567_v3 }
 0x7c9   :  { %v2569_v35 = vmul.f32 %v2568_v22, %v5451_v28 }
 0x7cb   :  { %v2570_v23 = vsel %vm728_vm1, %v2569_v35, 0.0 }
 0x7cc   :  { %2571 = vadd.xlane.f32.xlu0 %v2570_v23 }
 0x859   :  { %v2572_v4 = vpop.xlane.xlu0 %2571 }
 0x85a   :  { %v2574_v39 = vmax.f32 %v2573_v25, %v2572_v4 }
 0x85c   :  { %v2575_v8 = vsub.f32 %v2044_v47, %v2574_v39  ;;  %v2578_v11 = vsub.f32 %v2308_v56, %v2574_v39  ;;  %v2581_v41 = vsub.f32 %v2572_v4, %v2574_v39 }
 0x85e   :  { %v2576_v32 = vmul.f32 1.442695, %v2575_v8  ;;  %v2579_v38 = vmul.f32 1.442695, %v2578_v11  ;;  %v2582_v44 = vmul.f32 1.442695, %v2581_v41 }
 0x860   :  { %4059 = vpow2.f32 %v2576_v32 }
 0x861   :  { %4061 = vpow2.f32 %v2579_v38 }
 0x862   :  { %4063 = vpow2.f32 %v2582_v44 }
 0x86a   :  { %v4060_v16 = vpop.eup %4059 }
 0x86b   :  { %v4062_v26 = vpop.eup %4061 }
 0x86c   :  { %v2584_v28 = vadd.f32 %v4062_v26, %v4060_v16  ;;  %v4064_v57 = vpop.eup %4063 }
 0x86e   :  { %v2585_v42 = vadd.f32 %v4064_v57, %v2584_v28 }
 0x870   :  { %4065 = vrcp.f32 %v2585_v42 }
 0x87a   :  { %v4066_v5 = vpop.eup %4065 }
 0x87b   :  { %v2588_v53 = vmul.f32 %v4066_v5, %v4060_v16  ;;  %v2601_v7 = vmul.f32 %v4066_v5, %v4062_v26  ;;  %v2622_v62 = vmul.f32 %v4066_v5, %v4064_v57 }
 0x87d   :  { %v2592_v3 = vrot.slane %v2588_v53, %v4743_v15  ;;  %v2605_v22 = vrot.slane %v2601_v7, %v4743_v15  ;;  %v2626_v35 = vrot.slane %v2622_v62, %v4743_v15 }
 0x87f   :  { %v2593_v23 = vmul.f32 %v2592_v3, %v1900_v37  ;;  %v2594_v47 = vmul.f32 %v2592_v3, %v1901_v19  ;;  %v2595_v56 = vmul.f32 %v2592_v3, %v1902_v9  ;;  %v2596_v25 = vmul.f32 %v2592_v3, %v1903_v46 }
 0x880   :  { %v2597_v4 = vmul.f32 %v2592_v3, %v1904_v13  ;;  %v2598_v39 = vmul.f32 %v2592_v3, %v1905_v33  ;;  %v2599_v15 = vmul.f32 %v2592_v3, %v1906_v63  ;;  %v2600_v43 = vmul.f32 %v2592_v3, %v1907_v48 }
 0x881   :  { %v2606_v54 = vmul.f32 %v2605_v22, %v2170_v51  ;;  %v2607_v37 = vmul.f32 %v2605_v22, %v2171_v52  ;;  %v2608_v19 = vmul.f32 %v2605_v22, %v2172_v50  ;;  %v2609_v55 = vmul.f32 %v2605_v22, %v2173_v59 }
 0x882   :  { %v2610_v10 = vmul.f32 %v2605_v22, %v2174_v21  ;;  %v2611_v9 = vmul.f32 %v2605_v22, %v2175_v40  ;;  %v2612_v46 = vmul.f32 %v2605_v22, %v2176_v2  ;;  %v2613_v1 = vmul.f32 %v2605_v22, %v5647_v36 }
 0x883   :  { %v2614_v13 = vadd.f32 %v2606_v54, %v2593_v23  ;;  %v2615_v33 = vadd.f32 %v2607_v37, %v2594_v47  ;;  %v2616_v49 = vadd.f32 %v2608_v19, %v2595_v56  ;;  %v2617_v29 = vadd.f32 %v2609_v55, %v2596_v25 }
 0x884   :  { %v2618_v63 = vadd.f32 %v2610_v10, %v2597_v4  ;;  %v2619_v48 = vadd.f32 %v2611_v9, %v2598_v39  ;;  %v2620_v20 = vadd.f32 %v2612_v46, %v2599_v15  ;;  %v2621_v45 = vadd.f32 %v2613_v1, %v2600_v43 }
 0x885   :  { %v5648_v51 = vmax.f32 %v5392_v31, 0.0  ;;  %v2628_v34 = vmul.f32 %v2626_v35, %v5649_v58  ;;  %v5650_v50 = vmax.f32 %v5404_v0, 0.0  ;;  %v2630_v24 = vmul.f32 %v2626_v35, %v5651_v60 }
 0x886   :  { %v5652_v21 = vmax.f32 %v5420_v61, 0.0  ;;  %v2632_v18 = vmul.f32 %v2626_v35, %v5653_v17  ;;  %v5654_v2 = vmax.f32 %v5436_v30, 0.0  ;;  %v2634_v8 = vmul.f32 %v2626_v35, %v5655_v14 }
 0x887   :  { %v2627_v52 = vmul.f32 %v2626_v35, %v5648_v51  ;;  %v2629_v59 = vmul.f32 %v2626_v35, %v5650_v50  ;;  %v2636_v0 = vadd.f32 %v2628_v34, %v2615_v33  ;;  %v2638_v32 = vadd.f32 %v2630_v24, %v2617_v29 }
 0x888   :  { %v2631_v40 = vmul.f32 %v2626_v35, %v5652_v21  ;;  %v2633_v31 = vmul.f32 %v2626_v35, %v5654_v2  ;;  %v2640_v38 = vadd.f32 %v2632_v18, %v2619_v48  ;;  %v2642_v16 = vadd.f32 %v2634_v8, %v2621_v45 }
 0x889   :  { %v2635_v11 = vadd.f32 %v2627_v52, %v2614_v13  ;;  %v2637_v41 = vadd.f32 %v2629_v59, %v2616_v49  ;;  %2644 = vst [vmem:[#allocation8 + $0x8] sm:$0xff] %v2636_v0  ;;  %2646 = vst [vmem:[#allocation8 + $0x18] sm:$0xff] %v2638_v32 }
 0x88a   :  { %v2639_v12 = vadd.f32 %v2631_v40, %v2618_v63  ;;  %v2641_v44 = vadd.f32 %v2633_v31, %v2620_v20  ;;  %2648 = vst [vmem:[#allocation8 + $0x28] sm:$0xff] %v2640_v38  ;;  %2650 = vst [vmem:[#allocation8 + $0x38] sm:$0xff] %v2642_v16 }
 0x88b   :  { %2643 = vst [vmem:[#allocation8] sm:$0xff] %v2635_v11  ;;  %2645 = vst [vmem:[#allocation8 + $0x10] sm:$0xff] %v2637_v41 }
 0x88c   :  { %2647 = vst [vmem:[#allocation8 + $0x20] sm:$0xff] %v2639_v12  ;;  %2649 = vst [vmem:[#allocation8 + $0x30] sm:$0xff] %v2641_v44 }
 0x88d   :  { %4168 = shalt.err (!%p4165_p0)
}
 0x88e   :  { %s4169_s3 = scalar_lea.hbm %s5546_s13, 1024 }
 0x88f   :  { %p4170_p1 = scmp.ne.s32.totalorder %s5546_s13, %s4169_s3  ;;  %p4173_p2 = scmp.lt.u32.totalorder %s4169_s3, %s5546_s13 }
 0x891   :  { %p4175_p3 = pnand %p4173_p2, %p4170_p1 }
 0x893   :  { %4178 = shalt.err (!%p4175_p3)
}
 0x894   :  { %2662 = dma.vmem_to_hbm [thread:$0]  %s2657_s16, 1024, %s5546_s13, [#allocation4], %s4189_s8, %s4189_s8, %s4190_s26  }
 0x895   :  { %4183 = dma.done.wait [#allocation4], 1024  }
 0x896   :  { %4184 = vsyncadd [#allocation4], 4294966272 }
 0x897   :  { %2666 = vsyncpa [#allocation3], 1 }
 0x898   :  { %2667 = vsyncpa [#allocation6], 1 }
 0x899   :  { %2668 = vsyncpa [#allocation4], 1 }

</bundles_post_ra>
